<compile_context>
chip_gen: v5e
topology: v5e:2x2
jax: 0.10.0
libtpu: 0.0.40
codegen_flags: <defaults>
</compile_context>

<pallas_src>
import functools

import jax
import jax.numpy as jnp
from jax import lax
from jax.experimental import pallas as pl
from jax.experimental.pallas import tpu as pltpu

_INV_SQRT2 = 0.7071067811865476
_LANE = 128


def _gelu(x, approximate=False):
    if approximate:
        # tanh approximation -> EUP slot (opt-in speed knob; not bit-exact torch.nn.GELU()).
        return jax.nn.gelu(x, approximate=True)
    # Exact (erf-based) GELU, matching torch.nn.GELU() default.
    return 0.5 * x * (1.0 + lax.erf(x * _INV_SQRT2))


def _round_up(n, m):
    return ((n + m - 1) // m) * m


# ---------------------------------------------------------------------------
# Fused Pallas kernel: all GIN layers (grid axis) + pred_head (finalize step)
# ---------------------------------------------------------------------------
def _gin_fused_kernel(a_ref, x_ref, w1_ref, b1_ref, w2_ref, b2_ref,
                      wh_ref, bh_ref, o_ref, h_ref, *, approximate_gelu):
    """Grid = (num_gin_layers,).

    a_ref  : [Np, Np]    bf16  dense adjacency with +I folded in (A' = A + I), resident
    x_ref  : [Np, Cp]    bf16  padded input node features, resident
    w1_ref : [1, Cp, Cp] bf16  layer-l first Linear weight (streamed per grid step)
    b1_ref : [1, 1, Cp]  f32   layer-l first Linear bias
    w2_ref : [1, Cp, Cp] bf16  layer-l second Linear weight
    b2_ref : [1, 1, Cp]  f32   layer-l second Linear bias
    wh_ref : [Cp, Co_p]  bf16  pred_head weight, resident
    bh_ref : [1, Co_p]   f32   pred_head bias, resident
    o_ref  : [Np, Co_p]  f32   output (written only on the last grid step)
    h_ref  : [Np, Cp]    bf16  VMEM scratch holding node features across layers
    """
    l = pl.program_id(0)

    @pl.when(l == 0)
    def _init():
        h_ref[...] = x_ref[...]

    # GINConv, eps = 0: (1 + eps) * h + sum_{j in N(i)} h_j  ==  (A + I) @ h.
    # bf16 x bf16 operands, f32 accumulation on the MXU for every dot.
    h_in = h_ref[...].astype(jnp.bfloat16)
    agg = jnp.dot(a_ref[...], h_in, preferred_element_type=jnp.float32)

    # MLP: Linear -> GELU -> Linear  (padded channel columns stay exactly 0; padded node
    # rows pick up gelu(bias) garbage, but their adjacency columns are 0 and the wrapper
    # slices [:N], so nothing feeds back into real rows).
    h1 = _gelu(jnp.dot(agg.astype(jnp.bfloat16), w1_ref[0],
                       preferred_element_type=jnp.float32) + b1_ref[0],
               approximate_gelu)
    h2 = jnp.dot(h1.astype(jnp.bfloat16), w2_ref[0],
                 preferred_element_type=jnp.float32) + b2_ref[0]

    # GELU that follows every GINConv in the Sequential.
    h_new = _gelu(h2, approximate_gelu)
    h_ref[...] = h_new.astype(h_ref.dtype)

    # pred_head on the last layer only; the output block is resident across the whole
    # ("arbitrary") grid axis and written back to HBM once at the end.
    @pl.when(l == pl.num_programs(0) - 1)
    def _finalize():
        o_ref[...] = (jnp.dot(h_new.astype(jnp.bfloat16), wh_ref[...],
                              preferred_element_type=jnp.float32) + bh_ref[...])


# ---------------------------------------------------------------------------
# Wrapper: padding / adjacency densification glue in plain JAX, one pallas_call
# ---------------------------------------------------------------------------
def gin_forward(x, edge_index, layers, head, *,
                carry_dtype=jnp.bfloat16, approximate_gelu=False):
    """Full GIN forward.  layers: list of (w1, b1, w2, b2); head: (w, b).

    NOTE: weights are applied as x @ W with W shaped [in, out]; torch nn.Linear stores
    [out, in], so real checkpoints must be transposed when loaded.
    """
    N, C_in = x.shape
    H = layers[0][2].shape[0]
    w_head, b_head = head
    C_out = w_head.shape[1]
    L = len(layers)

    # Lane-dense padding: node axis 128-aligned; hidden/input channels padded to one common
    # 128-multiple width Cp; the head/output width is padded independently to Co_p.
    Np = _round_up(N, _LANE)
    Cp = _round_up(max(C_in, H), _LANE)
    Co_p = _round_up(C_out, _LANE)

    # Dense adjacency with the self term folded in: A'[dst, src] = #edges(src->dst) + I.
    # Built directly in bf16 (no f32 intermediate); exact for multiplicities <= 256.
    # If the graph is static, hoist/cache A' across forward calls.
    src, dst = edge_index[0], edge_index[1]
    A = jnp.zeros((Np, Np), jnp.bfloat16).at[dst, src].add(
        jnp.ones(src.shape, jnp.bfloat16))
    diag = jnp.arange(N)
    A = A.at[diag, diag].add(jnp.ones((N,), jnp.bfloat16))

    x_pad = jnp.zeros((Np, Cp), carry_dtype).at[:N, :C_in].set(x.astype(carry_dtype))

    def pad2(w, rows, cols, dtype):
        return jnp.zeros((rows, cols), dtype).at[:w.shape[0], :w.shape[1]].set(
            w.astype(dtype))

    W1 = jnp.stack([pad2(w1, Cp, Cp, jnp.bfloat16) for (w1, _, _, _) in layers])  # [L,Cp,Cp]
    B1 = jnp.stack([pad2(b1, 1, Cp, jnp.float32) for (_, b1, _, _) in layers])    # [L,1,Cp]
    W2 = jnp.stack([pad2(w2, Cp, Cp, jnp.bfloat16) for (_, _, w2, _) in layers])  # [L,Cp,Cp]
    B2 = jnp.stack([pad2(b2, 1, Cp, jnp.float32) for (_, _, _, b2) in layers])    # [L,1,Cp]
    Wh = pad2(w_head, Cp, Co_p, jnp.bfloat16)                                     # [Cp,Co_p]
    Bh = pad2(b_head, 1, Co_p, jnp.float32)                                       # [1,Co_p]

    carry_bytes = jnp.dtype(carry_dtype).itemsize
    # VMEM footprint with the chosen buffer counts (resident blocks single-buffered,
    # streamed per-layer weights double-buffered; sublane-1 biases pad to 8 sublanes).
    footprint = (
        Np * Np * 2                       # A'
        + Np * Cp * carry_bytes           # x
        + Np * Cp * carry_bytes           # h scratch
        + 2 * Cp * Cp * 2                 # W1 (2 bufs)
        + 2 * Cp * Cp * 2                 # W2 (2 bufs)
        + 2 * 8 * Cp * 4                  # B1 (2 bufs)
        + 2 * 8 * Cp * 4                  # B2 (2 bufs)
        + Cp * Co_p * 2                   # Wh
        + 8 * Co_p * 4                    # Bh
        + Np * Co_p * 4                   # output
    )
    vmem_limit = int(min(128 << 20, max(16 << 20, 2 * footprint + (2 << 20))))

    resident = pl.Buffered(1)   # constant index_map -> never re-fetched; one buffer suffices

    out_pad = pl.pallas_call(
        functools.partial(_gin_fused_kernel, approximate_gelu=approximate_gelu),
        out_shape=jax.ShapeDtypeStruct((Np, Co_p), jnp.float32),
        grid_spec=pltpu.PrefetchScalarGridSpec(
            num_scalar_prefetch=0,
            grid=(L,),
            in_specs=[
                pl.BlockSpec((Np, Np), lambda l: (0, 0), pipeline_mode=resident),   # A'
                pl.BlockSpec((Np, Cp), lambda l: (0, 0), pipeline_mode=resident),   # x
                pl.BlockSpec((1, Cp, Cp), lambda l: (l, 0, 0)),                     # W1[l]
                pl.BlockSpec((1, 1, Cp), lambda l: (l, 0, 0)),                      # B1[l]
                pl.BlockSpec((1, Cp, Cp), lambda l: (l, 0, 0)),                     # W2[l]
                pl.BlockSpec((1, 1, Cp), lambda l: (l, 0, 0)),                      # B2[l]
                pl.BlockSpec((Cp, Co_p), lambda l: (0, 0), pipeline_mode=resident), # Wh
                pl.BlockSpec((1, Co_p), lambda l: (0, 0), pipeline_mode=resident),  # Bh
            ],
            out_specs=pl.BlockSpec((Np, Co_p), lambda l: (0, 0), pipeline_mode=resident),
            scratch_shapes=[pltpu.VMEM((Np, Cp), carry_dtype)],  # h across layers
        ),
        compiler_params=pltpu.CompilerParams(
            # Layer axis is a sequential dependence (scratch/output revisited) -> "arbitrary".
            dimension_semantics=("arbitrary",),
            vmem_limit_bytes=vmem_limit,
        ),
    )(A, x_pad, W1, B1, W2, B2, Wh, Bh)

    return out_pad[:N, :C_out]


# ---------------------------------------------------------------------------
# Deterministic parameter init (synthetic weights, no checkpoint)
# ---------------------------------------------------------------------------
def init_params(key, in_channels, hidden_channels, out_channels, hidden_layers):
    layers = []
    dims_in = [in_channels] + [hidden_channels] * hidden_layers
    for d_in in dims_in:
        key, k1, k2, k3, k4 = jax.random.split(key, 5)
        w1 = jax.random.normal(k1, (d_in, hidden_channels), jnp.float32) * (
            1.0 / jnp.sqrt(float(d_in)))
        b1 = jax.random.normal(k2, (1, hidden_channels), jnp.float32) * 0.01
        w2 = jax.random.normal(k3, (hidden_channels, hidden_channels), jnp.float32) * (
            1.0 / jnp.sqrt(float(hidden_channels)))
        b2 = jax.random.normal(k4, (1, hidden_channels), jnp.float32) * 0.01
        layers.append((w1, b1, w2, b2))
    key, kw, kb = jax.random.split(key, 3)
    w_head = jax.random.normal(kw, (hidden_channels, out_channels), jnp.float32) * (
        1.0 / jnp.sqrt(float(hidden_channels)))
    b_head = jax.random.normal(kb, (1, out_channels), jnp.float32) * 0.01
    return layers, (w_head, b_head)


if __name__ == "__main__":
    key = jax.random.PRNGKey(0)
    N, C_in, C_hid, C_out, HIDDEN_LAYERS = 16, 8, 32, 4, 1  # 2 GIN layers total

    kx, kp = jax.random.split(key)
    x = jax.random.normal(kx, (N, C_in), jnp.float32)

    # Deterministic bidirectional ring graph: edge_index has shape [2, E], E = 2N
    idx = jnp.arange(N)
    src = jnp.concatenate([idx, (idx + 1) % N])
    dst = jnp.concatenate([(idx + 1) % N, idx])
    edge_index = jnp.stack([src, dst]).astype(jnp.int32)

    layers, head = init_params(kp, C_in, C_hid, C_out, HIDDEN_LAYERS)

    out = jax.jit(gin_forward)(x, edge_index, layers, head)
    out = jax.block_until_ready(out)
    assert out.shape == (N, C_out)
    print("KERNEL_OK")
</pallas_src>

<mosaic_0001>
module attributes {stable_mosaic.version = 11 : i64} {
  func.func @_gin_fused_kernel(%arg0: i32, %arg1: memref<128x128xbf16, #tpu.memory_space<vmem>>, %arg2: memref<128x128xbf16, #tpu.memory_space<vmem>>, %arg3: memref<1x128x128xbf16, #tpu.memory_space<vmem>>, %arg4: memref<1x1x128xf32, #tpu.memory_space<vmem>>, %arg5: memref<1x128x128xbf16, #tpu.memory_space<vmem>>, %arg6: memref<1x1x128xf32, #tpu.memory_space<vmem>>, %arg7: memref<128x128xbf16, #tpu.memory_space<vmem>>, %arg8: memref<1x128xf32, #tpu.memory_space<vmem>>, %arg9: memref<128x128xf32, #tpu.memory_space<vmem>>, %arg10: memref<128x128xbf16, #tpu.memory_space<vmem>>) attributes {dimension_semantics = [#tpu.dimension_semantics<arbitrary>], iteration_bounds = array<i64: 2>, scalar_prefetch = 0 : i64, scratch_operands = 1 : i64, tpu.core_type = #tpu.core_type<tc>, window_params = [{pipeline_mode = #tpu.pipeline_mode<synchronous>, transform_indices = @transform_0, window_bounds = array<i64: 128, 128>}, {pipeline_mode = #tpu.pipeline_mode<synchronous>, transform_indices = @transform_1, window_bounds = array<i64: 128, 128>}, {transform_indices = @transform_2, window_bounds = array<i64: 1, 128, 128>}, {transform_indices = @transform_3, window_bounds = array<i64: 1, 1, 128>}, {transform_indices = @transform_4, window_bounds = array<i64: 1, 128, 128>}, {transform_indices = @transform_5, window_bounds = array<i64: 1, 1, 128>}, {pipeline_mode = #tpu.pipeline_mode<synchronous>, transform_indices = @transform_6, window_bounds = array<i64: 128, 128>}, {pipeline_mode = #tpu.pipeline_mode<synchronous>, transform_indices = @transform_7, window_bounds = array<i64: 1, 128>}, {pipeline_mode = #tpu.pipeline_mode<synchronous>, transform_indices = @transform_8, window_bounds = array<i64: 128, 128>}]} {
    %c0_i32 = arith.constant 0 : i32
    %0 = arith.cmpi eq, %arg0, %c0_i32 : i32
    %1 = arith.extui %0 : i1 to i32
    %c0_i32_0 = arith.constant 0 : i32
    %2 = arith.cmpi ne, %1, %c0_i32_0 : i32
    scf.if %2 {
      %c0_27 = arith.constant 0 : index
      %c0_28 = arith.constant 0 : index
      %43 = vector.load %arg2[%c0_27, %c0_28] : memref<128x128xbf16, #tpu.memory_space<vmem>>, vector<128x128xbf16>
      %c0_29 = arith.constant 0 : index
      %c0_30 = arith.constant 0 : index
      %44 = vector.load %arg10[%c0_29, %c0_30] : memref<128x128xbf16, #tpu.memory_space<vmem>>, vector<128x128xbf16>
      tpu.vector_store %arg10[%c0_29, %c0_30], %43 {strides = array<i32>} : memref<128x128xbf16, #tpu.memory_space<vmem>>, vector<128x128xbf16>,
    } else {
    }
    %c0 = arith.constant 0 : index
    %c0_1 = arith.constant 0 : index
    %3 = vector.load %arg10[%c0, %c0_1] : memref<128x128xbf16, #tpu.memory_space<vmem>>, vector<128x128xbf16>
    %c0_2 = arith.constant 0 : index
    %c0_3 = arith.constant 0 : index
    %4 = vector.load %arg1[%c0_2, %c0_3] : memref<128x128xbf16, #tpu.memory_space<vmem>>, vector<128x128xbf16>
    %cst = arith.constant dense<0.000000e+00> : vector<128x128xf32>
    %5 = tpu.matmul %4, %3, %cst {dimension_numbers = #tpu.dot_dimension_numbers<[1], [0], [0], [1], [0, 0, 1, 1], [], []>} : vector<128x128xbf16>, vector<128x128xbf16>, vector<128x128xf32> -> vector<128x128xf32>
    %6 = arith.truncf %5 : vector<128x128xf32> to vector<128x128xbf16>
    %c0_4 = arith.constant 0 : index
    %c0_5 = arith.constant 0 : index
    %c0_6 = arith.constant 0 : index
    %7 = vector.load %arg3[%c0_4, %c0_5, %c0_6] : memref<1x128x128xbf16, #tpu.memory_space<vmem>>, vector<1x128x128xbf16>
    %8 = vector.shape_cast %7 : vector<1x128x128xbf16> to vector<128x128xbf16>
    %cst_7 = arith.constant dense<0.000000e+00> : vector<128x128xf32>
    %9 = tpu.matmul %6, %8, %cst_7 {dimension_numbers = #tpu.dot_dimension_numbers<[1], [0], [0], [1], [0, 0, 1, 1], [], []>} : vector<128x128xbf16>, vector<128x128xbf16>, vector<128x128xf32> -> vector<128x128xf32>
    %c0_8 = arith.constant 0 : index
    %c0_9 = arith.constant 0 : index
    %c0_10 = arith.constant 0 : index
    %10 = vector.load %arg4[%c0_8, %c0_9, %c0_10] : memref<1x1x128xf32, #tpu.memory_space<vmem>>, vector<1x1x128xf32>
    %11 = vector.shape_cast %10 : vector<1x1x128xf32> to vector<1x128xf32>
    %12 = vector.broadcast %11 : vector<1x128xf32> to vector<128x128xf32>
    %13 = arith.addf %9, %12 : vector<128x128xf32>
    %cst_11 = arith.constant 5.000000e-01 : f32
    %14 = vector.broadcast %cst_11 : f32 to vector<128x128xf32>
    %15 = arith.mulf %14, %13 : vector<128x128xf32>
    %cst_12 = arith.constant 0.707106769 : f32
    %16 = vector.broadcast %cst_12 : f32 to vector<128x128xf32>
    %17 = arith.mulf %13, %16 : vector<128x128xf32>
    %18 = math.erf %17 : vector<128x128xf32>
    %cst_13 = arith.constant 1.000000e+00 : f32
    %19 = vector.broadcast %cst_13 : f32 to vector<128x128xf32>
    %20 = arith.addf %19, %18 : vector<128x128xf32>
    %21 = arith.mulf %15, %20 : vector<128x128xf32>
    %22 = arith.truncf %21 : vector<128x128xf32> to vector<128x128xbf16>
    %c0_14 = arith.constant 0 : index
    %c0_15 = arith.constant 0 : index
    %c0_16 = arith.constant 0 : index
    %23 = vector.load %arg5[%c0_14, %c0_15, %c0_16] : memref<1x128x128xbf16, #tpu.memory_space<vmem>>, vector<1x128x128xbf16>
    %24 = vector.shape_cast %23 : vector<1x128x128xbf16> to vector<128x128xbf16>
    %cst_17 = arith.constant dense<0.000000e+00> : vector<128x128xf32>
    %25 = tpu.matmul %22, %24, %cst_17 {dimension_numbers = #tpu.dot_dimension_numbers<[1], [0], [0], [1], [0, 0, 1, 1], [], []>} : vector<128x128xbf16>, vector<128x128xbf16>, vector<128x128xf32> -> vector<128x128xf32>
    %c0_18 = arith.constant 0 : index
    %c0_19 = arith.constant 0 : index
    %c0_20 = arith.constant 0 : index
    %26 = vector.load %arg6[%c0_18, %c0_19, %c0_20] : memref<1x1x128xf32, #tpu.memory_space<vmem>>, vector<1x1x128xf32>
    %27 = vector.shape_cast %26 : vector<1x1x128xf32> to vector<1x128xf32>
    %28 = vector.broadcast %27 : vector<1x128xf32> to vector<128x128xf32>
    %29 = arith.addf %25, %28 : vector<128x128xf32>
    %cst_21 = arith.constant 5.000000e-01 : f32
    %30 = vector.broadcast %cst_21 : f32 to vector<128x128xf32>
    %31 = arith.mulf %30, %29 : vector<128x128xf32>
    %cst_22 = arith.constant 0.707106769 : f32
    %32 = vector.broadcast %cst_22 : f32 to vector<128x128xf32>
    %33 = arith.mulf %29, %32 : vector<128x128xf32>
    %34 = math.erf %33 : vector<128x128xf32>
    %cst_23 = arith.constant 1.000000e+00 : f32
    %35 = vector.broadcast %cst_23 : f32 to vector<128x128xf32>
    %36 = arith.addf %35, %34 : vector<128x128xf32>
    %37 = arith.mulf %31, %36 : vector<128x128xf32>
    %38 = arith.truncf %37 : vector<128x128xf32> to vector<128x128xbf16>
    %c0_24 = arith.constant 0 : index
    %c0_25 = arith.constant 0 : index
    %39 = vector.load %arg10[%c0_24, %c0_25] : memref<128x128xbf16, #tpu.memory_space<vmem>>, vector<128x128xbf16>
    tpu.vector_store %arg10[%c0_24, %c0_25], %38 {strides = array<i32>} : memref<128x128xbf16, #tpu.memory_space<vmem>>, vector<128x128xbf16>,
    %c1_i32 = arith.constant 1 : i32
    %40 = arith.cmpi eq, %arg0, %c1_i32 : i32
    %41 = arith.extui %40 : i1 to i32
    %c0_i32_26 = arith.constant 0 : i32
    %42 = arith.cmpi ne, %41, %c0_i32_26 : i32
    scf.if %42 {
      %43 = arith.truncf %37 : vector<128x128xf32> to vector<128x128xbf16>
      %c0_27 = arith.constant 0 : index
      %c0_28 = arith.constant 0 : index
      %44 = vector.load %arg7[%c0_27, %c0_28] : memref<128x128xbf16, #tpu.memory_space<vmem>>, vector<128x128xbf16>
      %cst_29 = arith.constant dense<0.000000e+00> : vector<128x128xf32>
      %45 = tpu.matmul %43, %44, %cst_29 {dimension_numbers = #tpu.dot_dimension_numbers<[1], [0], [0], [1], [0, 0, 1, 1], [], []>} : vector<128x128xbf16>, vector<128x128xbf16>, vector<128x128xf32> -> vector<128x128xf32>
      %c0_30 = arith.constant 0 : index
      %c0_31 = arith.constant 0 : index
      %46 = vector.load %arg8[%c0_30, %c0_31] : memref<1x128xf32, #tpu.memory_space<vmem>>, vector<1x128xf32>
      %47 = vector.broadcast %46 : vector<1x128xf32> to vector<128x128xf32>
      %48 = arith.addf %45, %47 : vector<128x128xf32>
      %c0_32 = arith.constant 0 : index
      %c0_33 = arith.constant 0 : index
      %49 = vector.load %arg9[%c0_32, %c0_33] : memref<128x128xf32, #tpu.memory_space<vmem>>, vector<128x128xf32>
      tpu.vector_store %arg9[%c0_32, %c0_33], %48 {strides = array<i32>} : memref<128x128xf32, #tpu.memory_space<vmem>>, vector<128x128xf32>,
    } else {
    }
    return
  }
  func.func @transform_0(%arg0: i32) -> (i32, i32) {
    %c0_i32 = arith.constant 0 : i32
    %c0_i32_0 = arith.constant 0 : i32
    %c0_i32_1 = arith.constant 0 : i32
    return %c0_i32, %c0_i32_0 : i32, i32
  }
  func.func @transform_1(%arg0: i32) -> (i32, i32) {
    %c0_i32 = arith.constant 0 : i32
    %c0_i32_0 = arith.constant 0 : i32
    %c0_i32_1 = arith.constant 0 : i32
    return %c0_i32, %c0_i32_0 : i32, i32
  }
  func.func @transform_2(%arg0: i32) -> (i32, i32, i32) {
    %c0_i32 = arith.constant 0 : i32
    %c0_i32_0 = arith.constant 0 : i32
    %c0_i32_1 = arith.constant 0 : i32
    return %arg0, %c0_i32, %c0_i32_0 : i32, i32, i32
  }
  func.func @transform_3(%arg0: i32) -> (i32, i32, i32) {
    %c0_i32 = arith.constant 0 : i32
    %c0_i32_0 = arith.constant 0 : i32
    %c0_i32_1 = arith.constant 0 : i32
    return %arg0, %c0_i32, %c0_i32_0 : i32, i32, i32
  }
  func.func @transform_4(%arg0: i32) -> (i32, i32, i32) {
    %c0_i32 = arith.constant 0 : i32
    %c0_i32_0 = arith.constant 0 : i32
    %c0_i32_1 = arith.constant 0 : i32
    return %arg0, %c0_i32, %c0_i32_0 : i32, i32, i32
  }
  func.func @transform_5(%arg0: i32) -> (i32, i32, i32) {
    %c0_i32 = arith.constant 0 : i32
    %c0_i32_0 = arith.constant 0 : i32
    %c0_i32_1 = arith.constant 0 : i32
    return %arg0, %c0_i32, %c0_i32_0 : i32, i32, i32
  }
  func.func @transform_6(%arg0: i32) -> (i32, i32) {
    %c0_i32 = arith.constant 0 : i32
    %c0_i32_0 = arith.constant 0 : i32
    %c0_i32_1 = arith.constant 0 : i32
    return %c0_i32, %c0_i32_0 : i32, i32
  }
  func.func @transform_7(%arg0: i32) -> (i32, i32) {
    %c0_i32 = arith.constant 0 : i32
    %c0_i32_0 = arith.constant 0 : i32
    %c0_i32_1 = arith.constant 0 : i32
    return %c0_i32, %c0_i32_0 : i32, i32
  }
  func.func @transform_8(%arg0: i32) -> (i32, i32) {
    %c0_i32 = arith.constant 0 : i32
    %c0_i32_0 = arith.constant 0 : i32
    %c0_i32_1 = arith.constant 0 : i32
    return %c0_i32, %c0_i32_0 : i32, i32
  }
}

</mosaic_0001>

<bundles_post_ra>
// kernel: gin_forward.1
= control target key start
LH: loop header
LB: loop body
LE: loop exit
PB: predicated region body
PF: predicated region fallthrough
CT: control target
= control target key end

     0   :  { %s2955_s27 = smov 0   ;;  %s4450_s0 = inlined_call_operand.vmem [shape: bf16[128,128], index: 0, kind: input, shape index: {}]   ;;  %s4451_s1 = inlined_call_operand.vmem [shape: bf16[128,128], index: 1, kind: input, shape index: {}]   ;;  %s4452_s2 = inlined_call_operand.vmem [shape: bf16[2,128,128], index: 2, kind: input, shape index: {}]   ;;  %s4453_s3 = inlined_call_operand.vmem [shape: f32[2,1,128], index: 3, kind: input, shape index: {}]   ;;  %s4454_s4 = inlined_call_operand.vmem [shape: bf16[2,128,128], index: 4, kind: input, shape index: {}]   ;;  %s4455_s5 = inlined_call_operand.vmem [shape: f32[2,1,128], index: 5, kind: input, shape index: {}]   ;;  %s4456_s6 = inlined_call_operand.vmem [shape: bf16[128,128], index: 6, kind: input, shape index: {}]   ;;  %s4457_s7 = inlined_call_operand.vmem [shape: f32[1,128], index: 7, kind: input, shape index: {}]   ;;  %s4458_s8 = inlined_call_operand.vmem [shape: f32[128,128], index: 8, kind: output, shape index: {}]  }
   0x1 LB: > { %s2961_s28 = sadd.s32 4294967295, %s2908_s27   ;;  %p2488_p0 = scmp.ge.s32.totalorder %s2908_s27, 1  ;;  %s2908_s27 = sphi %s2955_s27, %s18_s27  }
   0x2   : > { %p283_p1 = scmp.lt.s32.totalorder %s2908_s27, 3 }
   0x4   : > { %p284_p2 = pnand %p2488_p0, %p283_p1 }
   0x5   : > { %p323_p3 = scmp.lt.s32.totalorder (!%p284_p2), %s2961_s28, 1  ;;  %p2493_p4 = scmp.ne.s32.totalorder (!%p284_p2), %s2961_s28, 0 }
   0x6   : > { %287 = sbr.rel (%p284_p2) target bundleno = 970 (0x3ca), region = 52 }
   0xb   : > { %s2967_s29 = scalar_select %p323_p3, %s2961_s28, 1 }
   0xc   : > { %342 = sbr.rel (%p2493_p4) target bundleno = 26 (0x1a), region = 56 }
   0xd   : > { %s2689_s30 = sshll.u32 %s2967_s29, 6  ;;  %s330_s11 = scalar_lea.vmem %s4453_s3, %s2967_s29 }
   0xe   : > { %s2977_s14 = scalar_lea.vmem %s4452_s2, %s2689_s30  ;;  %s2982_s17 = scalar_lea.vmem %s4454_s4, %s2689_s30 }
   0xf   : > { %s2988_s20 = scalar_lea.vmem %s4455_s5, %s2967_s29 }
  0x11   : > { %v343_v0 = vld [vmem:[%s4451_s1] sm:$0xff]   ;;  %v345_v1 = vld [vmem:[%s4451_s1 + $0x8] sm:$0xff]   ;;  %v347_v2 = vld [vmem:[%s4451_s1 + $0x10] sm:$0xff]  }
  0x12   : > { %359 = vst [vmem:[#allocation2] sm:$0xff] %v343_v0   ;;  %v349_v3 = vld [vmem:[%s4451_s1 + $0x18] sm:$0xff]   ;;  %v351_v4 = vld [vmem:[%s4451_s1 + $0x20] sm:$0xff]   ;;  %v353_v5 = vld [vmem:[%s4451_s1 + $0x28] sm:$0xff]  }
  0x13   : > { %361 = vst [vmem:[#allocation2 + $0x8] sm:$0xff] %v345_v1   ;;  %v355_v6 = vld [vmem:[%s4451_s1 + $0x30] sm:$0xff]   ;;  %v357_v7 = vld [vmem:[%s4451_s1 + $0x38] sm:$0xff]  }
  0x14   : > { %363 = vst [vmem:[#allocation2 + $0x10] sm:$0xff] %v347_v2  }
  0x15   : > { %365 = vst [vmem:[#allocation2 + $0x18] sm:$0xff] %v349_v3  }
  0x16   : > { %367 = vst [vmem:[#allocation2 + $0x20] sm:$0xff] %v351_v4  }
  0x17   : > { %369 = vst [vmem:[#allocation2 + $0x28] sm:$0xff] %v353_v5  }
  0x18   : > { %371 = vst [vmem:[#allocation2 + $0x30] sm:$0xff] %v355_v6  }
  0x19   : > { %373 = vst [vmem:[#allocation2 + $0x38] sm:$0xff] %v357_v7  }
  0x1a PF: > { %v2692_v14 = vld [vmem:[#allocation2 + $0x8] sm:$0xff]  ;;  %v2691_v15 = vld [vmem:[#allocation2] sm:$0xff]  ;;  %v2705_v17 = vld [vmem:[%s4450_s0 + $0x30] sm:$0xff]  ;;  %p2654_p5 = scmp.ne.s32.totalorder %s2961_s28, 1 }
  0x1b   : > { %v2693_v13 = vld [vmem:[#allocation2 + $0x10] sm:$0xff]  ;;  %v2699_v16 = vld [vmem:[%s4450_s0] sm:$0xff]  ;;  %v2700_v18 = vld [vmem:[%s4450_s0 + $0x8] sm:$0xff] }
  0x1c   : > { %v2694_v12 = vld [vmem:[#allocation2 + $0x18] sm:$0xff]  ;;  %v2701_v20 = vld [vmem:[%s4450_s0 + $0x10] sm:$0xff]  ;;  %v2712_v24 = vld [vmem:[%s2977_s14 + $0x28] sm:$0xff] }
  0x1d   : > { %v2695_v11 = vld [vmem:[#allocation2 + $0x20] sm:$0xff]  ;;  %v2706_v19 = vld [vmem:[%s4450_s0 + $0x38] sm:$0xff]  ;;  %v2713_v23 = vld [vmem:[%s2977_s14 + $0x30] sm:$0xff] }
  0x1e   : > { %v2696_v10 = vld [vmem:[#allocation2 + $0x28] sm:$0xff]  ;;  %v2702_v21 = vld [vmem:[%s4450_s0 + $0x18] sm:$0xff]  ;;  %v2711_v25 = vld [vmem:[%s2977_s14 + $0x20] sm:$0xff] }
  0x1f   : > { %v2697_v9 = vld [vmem:[#allocation2 + $0x30] sm:$0xff]  ;;  %v2714_v22 = vld [vmem:[%s2977_s14 + $0x38] sm:$0xff]  ;;  %v2703_v26 = vld [vmem:[%s4450_s0 + $0x20] sm:$0xff] }
  0x20   : > { %v2698_v8 = vld [vmem:[#allocation2 + $0x38] sm:$0xff]  ;;  %628 = vmatpush.bf16.msra.mxu1 %v2714_v22  ;;  %v2704_v28 = vld [vmem:[%s4450_s0 + $0x28] sm:$0xff]  ;;  %v2709_v29 = vld [vmem:[%s2977_s14 + $0x10] sm:$0xff] }
  0x21   : > { %503 = vmatpush.bf16.msra.mxu0 %v2698_v8  ;;  %2778 = vmatpush.bf16.msra.mxu3 %v2698_v8  ;;  %v2710_v27 = vld [vmem:[%s2977_s14 + $0x18] sm:$0xff]  ;;  %v2708_v30 = vld [vmem:[%s2977_s14 + $0x8] sm:$0xff]  ;;  %v2707_v31 = vld [vmem:[%s2977_s14] sm:$0xff] }
  0x22   : > { %v3052_v57 = vld [vmem:[%s330_s11] ss:$0 sm:$0xff]  ;;  %v2722_v61 = vld [vmem:[%s2982_s17 + $0x38] sm:$0xff]  ;;  %v2721_v4 = vld [vmem:[%s2982_s17 + $0x30] sm:$0xff] }
  0x23   : > { %1457 = vmatpush.bf16.msra.mxu2 %v2722_v61 }
  0x24   : > { %629 = vmatpush.bf16.msra.mxu1 %v2713_v23 }
  0x25   : > { %504 = vmatpush.bf16.msra.mxu0 %v2697_v9  ;;  %2779 = vmatpush.bf16.msra.mxu3 %v2697_v9 }
  0x27   : > { %1458 = vmatpush.bf16.msra.mxu2 %v2721_v4 }
  0x28   : > { %630 = vmatpush.bf16.msra.mxu1 %v2712_v24 }
  0x29   : > { %505 = vmatpush.bf16.msra.mxu0 %v2696_v10  ;;  %2780 = vmatpush.bf16.msra.mxu3 %v2696_v10  ;;  %v2720_v10 = vld [vmem:[%s2982_s17 + $0x28] sm:$0xff] }
  0x2b   : > { %1459 = vmatpush.bf16.msra.mxu2 %v2720_v10 }
  0x2c   : > { %631 = vmatpush.bf16.msra.mxu1 %v2711_v25 }
  0x2d   : > { %506 = vmatpush.bf16.msra.mxu0 %v2695_v11  ;;  %2781 = vmatpush.bf16.msra.mxu3 %v2695_v11 }
  0x30   : > { %632 = vmatpush.bf16.msra.mxu1 %v2710_v27 }
  0x31   : > { %507 = vmatpush.bf16.msra.mxu0 %v2694_v12  ;;  %2782 = vmatpush.bf16.msra.mxu3 %v2694_v12 }
  0x34   : > { %633 = vmatpush.bf16.msra.mxu1 %v2709_v29 }
  0x35   : > { %508 = vmatpush.bf16.msra.mxu0 %v2693_v13  ;;  %2783 = vmatpush.bf16.msra.mxu3 %v2693_v13 }
  0x38   : > { %634 = vmatpush.bf16.msra.mxu1 %v2708_v30 }
  0x39   : > { %509 = vmatpush.bf16.msra.mxu0 %v2692_v14  ;;  %2784 = vmatpush.bf16.msra.mxu3 %v2692_v14 }
  0x3c   : > { %635 = vmatpush.bf16.msra.mxu1 %v2707_v31 }
  0x3d   : > { %510 = vmatpush.bf16.msra.mxu0 %v2691_v15  ;;  %2785 = vmatpush.bf16.msra.mxu3 %v2691_v15 }
  0x40   : > { %511 = vmatmul.bf16.vlgmr.msra.gmra.mxu0 %v2699_v16  ;;  %541 = vmatmul.bf16.vlgmr.msra.gmra.mxu3 %v2705_v17 }
  0x41   : > { %2786 = vmatpush.bf16.msrb.mxu3 %v2714_v22 }
  0x45   : > { %2787 = vmatpush.bf16.msrb.mxu3 %v2713_v23 }
  0x49   : > { %2788 = vmatpush.bf16.msrb.mxu3 %v2712_v24 }
  0x4d   : > { %2789 = vmatpush.bf16.msrb.mxu3 %v2711_v25 }
  0x50   : > { %516 = vmatmul.bf16.gmra.mxu0 %v2700_v18  ;;  %546 = vmatmul.bf16.gmra.mxu3 %v2706_v19 }
  0x51   : > { %2790 = vmatpush.bf16.msrb.mxu3 %v2710_v27 }
  0x55   : > { %2791 = vmatpush.bf16.msrb.mxu3 %v2709_v29 }
  0x59   : > { %2792 = vmatpush.bf16.msrb.mxu3 %v2708_v30 }
  0x5d   : > { %2793 = vmatpush.bf16.msrb.mxu3 %v2707_v31 }
  0x60   : > { %521 = vmatmul.bf16.gmra.mxu0 %v2701_v20 }
  0x61   : > { %2794 = vmatpush.bf16.msra.mxu3 %v2722_v61 }
  0x65   : > { %2795 = vmatpush.bf16.msra.mxu3 %v2721_v4 }
  0x69   : > { %2796 = vmatpush.bf16.msra.mxu3 %v2720_v10 }
  0x70   : > { %526 = vmatmul.bf16.gmra.mxu0 %v2702_v21  ;;  %v2719_v21 = vld [vmem:[%s2982_s17 + $0x20] sm:$0xff] }
  0x71   : > { %1460 = vmatpush.bf16.msra.mxu2 %v2719_v21  ;;  %2797 = vmatpush.bf16.msra.mxu3 %v2719_v21 }
  0x80   : > { %531 = vmatmul.bf16.gmra.mxu0 %v2703_v26 }
  0x90   : > { %536 = vmatmul.bf16.gmra.mxu0 %v2704_v28 }
  0xbd   : > { %v512_v32 = vpop.f32.mrf.mxu0 }
  0xc3   : > { %v542_v33 = vpop.f32.mrf.mxu3 }
  0xc5   : > { %v514_v34 = vpop.f32.mrf.mxu0 }
  0xc6   : > { %v552_v35 = vpack.c.bf16 %v514_v34, %v512_v32  ;;  %v2718_v32 = vld [vmem:[%s2982_s17 + $0x18] sm:$0xff] }
  0xc7   : > { %1461 = vmatpush.bf16.msra.mxu2 %v2718_v32  ;;  %2798 = vmatpush.bf16.msra.mxu3 %v2718_v32 }
  0xc8   : > { %636 = vmatmul.bf16.vlgmr.msra.gmra.mxu1 %v552_v35 }
  0xcb   : > { %v544_v36 = vpop.f32.mrf.mxu3 }
  0xcc   : > { %v558_v37 = vpack.c.bf16 %v544_v36, %v542_v33 }
  0xcd   : > { %v517_v38 = vpop.f32.mrf.mxu0 }
  0xce   : > { %666 = vmatmul.bf16.vlgmr.msrb.gmra.mxu3 %v558_v37 }
  0xd3   : > { %v547_v39 = vpop.f32.mrf.mxu3 }
  0xd5   : > { %v519_v40 = vpop.f32.mrf.mxu0 }
  0xd6   : > { %v553_v41 = vpack.c.bf16 %v519_v40, %v517_v38 }
  0xd8   : > { %641 = vmatmul.bf16.gmra.mxu1 %v553_v41 }
  0xdb   : > { %v549_v42 = vpop.f32.mrf.mxu3 }
  0xdc   : > { %v559_v43 = vpack.c.bf16 %v549_v42, %v547_v39 }
  0xdd   : > { %v522_v44 = vpop.f32.mrf.mxu0 }
  0xde   : > { %671 = vmatmul.bf16.gmra.mxu3 %v559_v43 }
  0xe5   : > { %v524_v45 = vpop.f32.mrf.mxu0 }
  0xe6   : > { %v554_v46 = vpack.c.bf16 %v524_v45, %v522_v44 }
  0xe8   : > { %646 = vmatmul.bf16.gmra.mxu1 %v554_v46 }
  0xed   : > { %v527_v47 = vpop.f32.mrf.mxu0 }
  0xf5   : > { %v529_v48 = vpop.f32.mrf.mxu0 }
  0xf6   : > { %v555_v49 = vpack.c.bf16 %v529_v48, %v527_v47  ;;  %v2717_v47 = vld [vmem:[%s2982_s17 + $0x10] sm:$0xff] }
  0xf7   : > { %1462 = vmatpush.bf16.msra.mxu2 %v2717_v47  ;;  %2799 = vmatpush.bf16.msra.mxu3 %v2717_v47 }
  0xf8   : > { %651 = vmatmul.bf16.gmra.mxu1 %v555_v49 }
  0xfd   : > { %v532_v50 = vpop.f32.mrf.mxu0 }
 0x105   : > { %v534_v51 = vpop.f32.mrf.mxu0 }
 0x106   : > { %v556_v52 = vpack.c.bf16 %v534_v51, %v532_v50 }
 0x108   : > { %656 = vmatmul.bf16.gmra.mxu1 %v556_v52 }
 0x10d   : > { %v537_v53 = vpop.f32.mrf.mxu0 }
 0x115   : > { %v539_v54 = vpop.f32.mrf.mxu0 }
 0x116   : > { %v557_v55 = vpack.c.bf16 %v539_v54, %v537_v53 }
 0x118   : > { %661 = vmatmul.bf16.gmra.mxu1 %v557_v55 }
 0x145   : > { %v637_v56 = vpop.f32.mrf.mxu1 }
 0x146   : > { %v3055_v58 = vadd.f32 %v3052_v57, %v637_v56 }
 0x148   : > { %v3058_v60 = vmul.f32 0.70710677, %v3055_v58 }
 0x14a   : > { %v709_v0 = vmul.f32 %v3058_v60, %v3058_v60 }
 0x14c   : > { %v3075_v6 = vmin.f32 %v709_v0, 16.0  ;;  %v2716_v0 = vld [vmem:[%s2982_s17 + $0x8] sm:$0xff] }
 0x14d   : > { %v639_v59 = vpop.f32.mrf.mxu1  ;;  %1463 = vmatpush.bf16.msra.mxu2 %v2716_v0  ;;  %2800 = vmatpush.bf16.msra.mxu3 %v2716_v0 }
 0x14e   : > { %v3070_v2 = vadd.f32 %v3052_v57, %v639_v59  ;;  %v722_v16 = vmul.f32 3.8918573e-05, %v3075_v6  ;;  %v711_v26 = vmul.f32 2.1237322e-06, %v3075_v6 }
 0x150   : > { %v3080_v8 = vmul.f32 0.70710677, %v3070_v2  ;;  %v723_v27 = vadd.f32 0.001143296, %v722_v16  ;;  %v712_v37 = vadd.f32 0.00028619796, %v711_v26 }
 0x151   : > { %v667_v62 = vpop.f32.mrf.mxu3 }
 0x152   : > { %v3062_v63 = vadd.f32 %v3052_v57, %v667_v62  ;;  %v749_v17 = vmul.f32 %v3080_v8, %v3080_v8  ;;  %v724_v38 = vmul.f32 %v723_v27, %v3075_v6  ;;  %v713_v51 = vmul.f32 %v712_v37, %v3075_v6 }
 0x154   : > { %v3067_v1 = vmul.f32 0.70710677, %v3062_v63  ;;  %v3106_v28 = vmin.f32 %v749_v17, 16.0  ;;  %v725_v53 = vadd.f32 0.014752088, %v724_v38 }
 0x155   : > { %v642_v3 = vpop.f32.mrf.mxu1 }
 0x156   : > { %v1189_v5 = vmul.f32 %v3067_v1, %v3067_v1  ;;  %v3086_v13 = vadd.f32 %v3052_v57, %v642_v3  ;;  %v751_v39 = vmul.f32 2.1237322e-06, %v3106_v28 }
 0x158   : > { %v3077_v7 = vmin.f32 %v1189_v5, 16.0  ;;  %v3101_v24 = vmul.f32 0.70710677, %v3086_v13  ;;  %v752_v54 = vadd.f32 0.00028619796, %v751_v39 }
 0x159   : > { %v669_v9 = vpop.f32.mrf.mxu3 }
 0x15a   : > { %v1191_v11 = vmul.f32 2.1237322e-06, %v3077_v7  ;;  %v1202_v12 = vmul.f32 3.8918573e-05, %v3077_v7  ;;  %v3089_v14 = vadd.f32 %v3052_v57, %v669_v9  ;;  %v789_v34 = vmul.f32 %v3101_v24, %v3101_v24 }
 0x15b   : > { %v714_v9 = vadd.f32 0.0036580483, %v713_v51 }
 0x15c   : > { %v1192_v15 = vadd.f32 0.00028619796, %v1191_v11  ;;  %v1203_v18 = vadd.f32 0.001143296, %v1202_v12  ;;  %v3095_v19 = vmul.f32 0.70710677, %v3089_v14  ;;  %v726_v11 = vmul.f32 %v725_v53, %v3075_v6 }
 0x15d   : > { %v644_v20 = vpop.f32.mrf.mxu1  ;;  %v3124_v49 = vmin.f32 %v789_v34, 16.0  ;;  %v753_v12 = vmul.f32 %v752_v54, %v3106_v28 }
 0x15e   : > { %v1193_v22 = vmul.f32 %v1192_v15, %v3077_v7  ;;  %v1204_v23 = vmul.f32 %v1203_v18, %v3077_v7  ;;  %v1229_v25 = vmul.f32 %v3095_v19, %v3095_v19  ;;  %v3120_v46 = vadd.f32 %v3052_v57, %v644_v20  ;;  %v2715_v18 = vld [vmem:[%s2982_s17] sm:$0xff] }
 0x15f   : > { %v791_v4 = vmul.f32 2.1237322e-06, %v3124_v49  ;;  %1464 = vmatpush.bf16.msra.mxu2 %v2715_v18  ;;  %v727_v32 = vadd.f32 0.112945676, %v726_v11  ;;  %2801 = vmatpush.bf16.msra.mxu3 %v2715_v18 }
 0x160   : > { %v1194_v29 = vadd.f32 0.0036580483, %v1193_v22  ;;  %v1205_v30 = vadd.f32 0.014752088, %v1204_v23  ;;  %v3108_v31 = vmin.f32 %v1229_v25, 16.0 }
 0x161   : > { %v672_v43 = vpop.f32.mrf.mxu3  ;;  %v3133_v62 = vmul.f32 0.70710677, %v3120_v46  ;;  %v792_v22 = vadd.f32 0.00028619796, %v791_v4  ;;  %v3192_v4 = vmul.f32 0.5, %v3070_v2 }
 0x162   : > { %v1206_v33 = vmul.f32 %v1205_v30, %v3077_v7  ;;  %v1231_v35 = vmul.f32 2.1237322e-06, %v3108_v31  ;;  %v1242_v36 = vmul.f32 3.8918573e-05, %v3108_v31  ;;  %v1195_v40 = vmul.f32 %v1194_v29, %v3077_v7 }
 0x163   : > { %v3130_v59 = vadd.f32 %v3052_v57, %v672_v43  ;;  %v829_v21 = vmul.f32 %v3133_v62, %v3133_v62  ;;  %v715_v29 = vmul.f32 %v714_v9, %v3075_v6  ;;  %v793_v39 = vmul.f32 %v792_v22, %v3124_v49 }
 0x164   : > { %v1207_v41 = vadd.f32 0.112945676, %v1206_v33  ;;  %v1232_v42 = vadd.f32 0.00028619796, %v1231_v35  ;;  %v1243_v45 = vadd.f32 0.001143296, %v1242_v36 }
 0x165   : > { %v647_v44 = vpop.f32.mrf.mxu1  ;;  %v1196_v55 = vadd.f32 0.05243302, %v1195_v40  ;;  %v3145_v17 = vmul.f32 0.70710677, %v3130_v59  ;;  %v754_v33 = vadd.f32 0.0036580483, %v753_v12 }
 0x166   : > { %v1208_v48 = vmul.f32 %v1207_v41, %v3077_v7  ;;  %v1233_v50 = vmul.f32 %v1232_v42, %v3108_v31  ;;  %v1244_v52 = vmul.f32 %v1243_v45, %v3108_v31  ;;  %v3153_v25 = vadd.f32 %v3052_v57, %v647_v44 }
 0x167   : > { %v1197_v15 = vmul.f32 %v1196_v55, %v3077_v7  ;;  %v1269_v35 = vmul.f32 %v3145_v17, %v3145_v17  ;;  %v3159_v37 = vmin.f32 %v829_v21, 16.0  ;;  %v3169_v42 = vmul.f32 0.5, %v3055_v58 }
 0x168   : > { %v1209_v56 = vadd.f32 0.4994258, %v1208_v48  ;;  %v1245_v61 = vadd.f32 0.014752088, %v1244_v52  ;;  %v1234_v5 = vadd.f32 0.0036580483, %v1233_v50  ;;  %v728_v45 = vmul.f32 %v727_v32, %v3075_v6 }
 0x169   : > { %v674_v26 = vpop.f32.mrf.mxu3  ;;  %v1198_v34 = vadd.f32 0.18741608, %v1197_v15  ;;  %v3166_v41 = vmul.f32 0.70710677, %v3153_v25  ;;  %v716_v43 = vadd.f32 0.05243302, %v715_v29  ;;  %v755_v48 = vmul.f32 %v754_v33, %v3106_v28 }
 0x16a   : > { %v1210_v3 = vmul.f32 %v1209_v56, %v3077_v7  ;;  %v1246_v10 = vmul.f32 %v1245_v61, %v3108_v31  ;;  %v1235_v23 = vmul.f32 %v1234_v5, %v3108_v31  ;;  %v3162_v38 = vadd.f32 %v3052_v57, %v674_v26 }
 0x16b   : > { %v1199_v50 = vmul.f32 %v1198_v34, %v3077_v7  ;;  %v3175_v51 = vmin.f32 %v1269_v35, 16.0  ;;  %v869_v52 = vmul.f32 %v3166_v41, %v3166_v41  ;;  %v831_v58 = vmul.f32 2.1237322e-06, %v3159_v37 }
 0x16c   : > { %v3142_v16 = vadd.f32 1.0, %v1210_v3  ;;  %v1247_v20 = vadd.f32 0.112945676, %v1246_v10  ;;  %v1236_v40 = vadd.f32 0.05243302, %v1235_v23  ;;  %v717_v21 = vmul.f32 %v716_v43, %v3075_v6 }
 0x16d   : > { %v649_v27 = vpop.f32.mrf.mxu1  ;;  %v3184_v55 = vmul.f32 0.70710677, %v3162_v38  ;;  %v794_v56 = vadd.f32 0.0036580483, %v793_v39  ;;  %v1271_v7 = vmul.f32 2.1237322e-06, %v3175_v51 }
 0x16e   : > { %2836 = vrcp.f32 %v3142_v16  ;;  %v1248_v30 = vmul.f32 %v1247_v20, %v3108_v31  ;;  %vm1217_vm0 = vweird.f32 %v3142_v16  ;;  %v1237_v61 = vmul.f32 %v1236_v40, %v3108_v31 }
 0x16f   : > { %v1223_v3 = vand.u32 2147483648, %v3142_v16  ;;  %v1200_v5 = vadd.f32 1.1283791, %v1199_v50  ;;  %v1221_v9 = vand.u32 2147483647, %v3142_v16  ;;  %v3195_v10 = vmin.f32 %v869_v52, 16.0 }
 0x170   : > { %v1249_v36 = vadd.f32 0.4994258, %v1248_v30  ;;  %v832_v15 = vadd.f32 0.00028619796, %v831_v58  ;;  %v1309_v18 = vmul.f32 %v3184_v55, %v3184_v55  ;;  %v3200_v20 = vadd.f32 %v3052_v57, %v649_v27 }
 0x171   : > { %v1238_v22 = vadd.f32 0.18741608, %v1237_v61  ;;  %v1272_v23 = vadd.f32 0.00028619796, %v1271_v7  ;;  %v729_v26 = vadd.f32 0.4994258, %v728_v45  ;;  %v795_v33 = vmul.f32 %v794_v56, %v3124_v49 }
 0x172   : > { %v1250_v44 = vmul.f32 %v1249_v36, %v3108_v31  ;;  %v756_v29 = vadd.f32 0.05243302, %v755_v48  ;;  %v1224_v32 = vor.u32 1.1754944e-38, %v1223_v3  ;;  %v1201_v34 = vmul.f32 %v1200_v5, %v3067_v1 }
 0x173   : > { %vm1222_vm3 = vcmp.eq.f32.partialorder %v1221_v9, 8.507059e+37  ;;  %v871_v27 = vmul.f32 2.1237322e-06, %v3195_v10  ;;  %v833_v39 = vmul.f32 %v832_v15, %v3159_v37  ;;  %v3218_v40 = vmin.f32 %v1309_v18, 16.0 }
 0x174   : > { %v2837_v47 = vpop.eup %2836  ;;  %v3180_v54 = vadd.f32 1.0, %v1250_v44  ;;  %v3221_v43 = vmul.f32 0.70710677, %v3200_v20  ;;  %v1239_v44 = vmul.f32 %v1238_v22, %v3108_v31  ;;  %v1273_v45 = vmul.f32 %v1272_v23, %v3175_v51 }
 0x175   : > { %v1213_v53 = vmul.f32 %v2837_v47, %v3142_v16  ;;  %vm1218_vm1 = vweird.f32 %v2837_v47  ;;  %v652_v11 = vpop.f32.mrf.mxu1  ;;  %v1311_v52 = vmul.f32 2.1237322e-06, %v3218_v40  ;;  %v872_v58 = vadd.f32 0.00028619796, %v871_v27 }
 0x176   : > { %2838 = vrcp.f32 %v3180_v54  ;;  %vm3205_vm2 = vmor %vm1217_vm0, %vm1218_vm1  ;;  %v3213_v35 = vadd.f32 %v3052_v57, %v652_v11  ;;  %vm1257_vm4 = vweird.f32 %v3180_v54  ;;  %v1261_v50 = vand.u32 2147483647, %v3180_v54 }
 0x177   : > { %v1214_v0 = vsub.f32 1.0, %v1213_v53  ;;  %v718_v31 = vadd.f32 0.18741608, %v717_v21  ;;  %v796_v61 = vadd.f32 0.05243302, %v795_v33  ;;  %v757_v15 = vmul.f32 %v756_v29, %v3106_v28 }
 0x178   : > { %v3231_v56 = vmul.f32 0.70710677, %v3213_v35  ;;  %v834_v7 = vadd.f32 0.0036580483, %v833_v39  ;;  %v1240_v5 = vadd.f32 1.1283791, %v1239_v44 }
 0x179   : > { %v1215_v12 = vmul.f32 %v2837_v47, %v1214_v0  ;;  %v909_v0 = vmul.f32 %v3221_v43, %v3221_v43  ;;  %v1274_v11 = vadd.f32 0.0036580483, %v1273_v45  ;;  %v1312_v21 = vadd.f32 0.00028619796, %v1311_v52 }
 0x17a   : > { %v949_v22 = vmul.f32 %v3231_v56, %v3231_v56  ;;  %vm1262_vm7 = vcmp.eq.f32.partialorder %v1261_v50, 8.507059e+37  ;;  %v797_v33 = vmul.f32 %v796_v61, %v3124_v49  ;;  %v835_v29 = vmul.f32 %v834_v7, %v3159_v37 }
 0x17b   : > { %v1216_v30 = vadd.f32 %v2837_v47, %v1215_v12  ;;  %v1275_v44 = vmul.f32 %v1274_v11, %v3175_v51  ;;  %v1313_v45 = vmul.f32 %v1312_v21, %v3218_v40  ;;  %v758_v50 = vadd.f32 0.18741608, %v757_v15 }
 0x17c   : > { %v2839_v16 = vpop.eup %2838 }
 0x17d   : > { %v1220_v36 = vsel %vm3205_vm2, %v2837_v47, %v1216_v30  ;;  %v1253_v1 = vmul.f32 %v2839_v16, %v3180_v54  ;;  %v1263_v47 = vand.u32 2147483648, %v3180_v54  ;;  %vm1258_vm5 = vweird.f32 %v2839_v16  ;;  %v654_v12 = vpop.f32.mrf.mxu1 }
 0x17e   : > { %v1225_v48 = vsel %vm1222_vm3, %v1224_v32, %v1220_v36  ;;  %vm3238_vm6 = vmor %vm1257_vm4, %vm1258_vm5  ;;  %v873_v30 = vmul.f32 %v872_v58, %v3195_v10  ;;  %v730_v32 = vmul.f32 %v729_v26, %v3075_v6  ;;  %v3248_v54 = vmin.f32 %v909_v0, 16.0 }
 0x17f   : > { %v1254_v53 = vsub.f32 1.0, %v1253_v1  ;;  %v1226_v3 = vmul.f32 %v1225_v48, %v1201_v34  ;;  %v1264_v2 = vor.u32 1.1754944e-38, %v1263_v47  ;;  %v3251_v34 = vadd.f32 %v3052_v57, %v654_v12 }
 0x180   : > { %v1241_v36 = vmul.f32 %v1240_v5, %v3095_v19  ;;  %v689_v1 = vmul.f32 0.5, %v3062_v63  ;;  %v3259_v48 = vmin.f32 %v949_v22, 16.0  ;;  %v874_v52 = vadd.f32 0.0036580483, %v873_v30 }
 0x181   : > { %v1255_v9 = vmul.f32 %v2839_v16, %v1254_v53  ;;  %v2602_v27 = vclamps-f32 %v1226_v3, 1.0  ;;  %v3261_v53 = vadd.f32 1.0, %v730_v32  ;;  %v719_v58 = vmul.f32 %v718_v31, %v3075_v6 }
 0x182   : > { %v798_v19 = vadd.f32 0.18741608, %v797_v33  ;;  %v911_v61 = vmul.f32 2.1237322e-06, %v3248_v54  ;;  %v836_v0 = vadd.f32 0.05243302, %v835_v29  ;;  %v759_v6 = vmul.f32 %v758_v50, %v3106_v28 }
 0x183   : > { %v1256_v23 = vadd.f32 %v2839_v16, %v1255_v9  ;;  %v1361_v7 = vadd.f32 1.0, %v2602_v27  ;;  %v1276_v3 = vadd.f32 0.05243302, %v1275_v44  ;;  %v3269_v5 = vmul.f32 0.5, %v3086_v13 }
 0x184   : > { %v690_v9 = vmul.f32 0.5, %v3089_v14  ;;  %v1314_v11 = vadd.f32 0.0036580483, %v1313_v45  ;;  %v951_v12 = vmul.f32 2.1237322e-06, %v3259_v48  ;;  %v875_v15 = vmul.f32 %v874_v52, %v3195_v10 }
 0x185   : > { %v1260_v39 = vsel %vm3238_vm6, %v2839_v16, %v1256_v23  ;;  %v3266_v16 = vmul.f32 0.70710677, %v3251_v34  ;;  %v657_v18 = vpop.f32.mrf.mxu1  ;;  %2840 = vrcp.f32 %v3261_v53  ;;  %v799_v21 = vmul.f32 %v798_v19, %v3124_v49 }
 0x186   : > { %v1265_v26 = vsel %vm1262_vm7, %v1264_v2, %v1260_v39  ;;  %v720_v2 = vadd.f32 1.1283791, %v719_v58  ;;  %v912_v22 = vadd.f32 0.00028619796, %v911_v61  ;;  %v1377_v23 = vmul.f32 %v1361_v7, %v689_v1 }
 0x187   : > { %v1266_v47 = vmul.f32 %v1265_v26, %v1241_v36  ;;  %v989_v13 = vmul.f32 %v3266_v16, %v3266_v16  ;;  %v837_v30 = vmul.f32 %v836_v0, %v3159_v37  ;;  %v1277_v32 = vmul.f32 %v1276_v3, %v3175_v51 }
 0x188   : > { %v3282_v33 = vmul.f32 0.5, %v3120_v46  ;;  %v1315_v29 = vmul.f32 %v1314_v11, %v3218_v40  ;;  %v952_v27 = vadd.f32 0.00028619796, %v951_v12  ;;  %v3286_v36 = vadd.f32 %v3052_v57, %v657_v18 }
 0x189   : > { %v2603_v63 = vclamps-f32 %v1266_v47, 1.0  ;;  %v760_v39 = vadd.f32 1.1283791, %v759_v6  ;;  %v3289_v26 = vmul.f32 0.5, %v3130_v59  ;;  %v876_v1 = vadd.f32 0.05243302, %v875_v15 }
 0x18a   : > { %v800_v45 = vadd.f32 1.1283791, %v799_v21  ;;  %v3292_v50 = vmul.f32 0.5, %v3153_v25  ;;  %v913_v47 = vmul.f32 %v912_v22, %v3248_v54  ;;  %v3295_v46 = vmin.f32 %v989_v13, 16.0 }
 0x18b   : > { %v1362_v31 = vadd.f32 1.0, %v2603_v63  ;;  %v3297_v52 = vpop.eup %2840  ;;  %v3300_v58 = vmul.f32 %v720_v2, %v3058_v60  ;;  %v838_v19 = vadd.f32 0.18741608, %v837_v30  ;;  %v1278_v61 = vadd.f32 0.18741608, %v1277_v32 }
 0x18c   : > { %v762_v7 = vmul.f32 3.8918573e-05, %v3106_v28  ;;  %v1316_v59 = vadd.f32 0.05243302, %v1315_v29  ;;  %v953_v63 = vmul.f32 %v952_v27, %v3259_v48  ;;  %v3305_v25 = vmul.f32 0.70710677, %v3286_v36 }
 0x18d   : > { %v1378_v14 = vmul.f32 %v1362_v31, %v690_v9  ;;  %v802_v0 = vmul.f32 3.8918573e-05, %v3124_v49  ;;  %v877_v3 = vmul.f32 %v876_v1, %v3195_v10  ;;  %v3310_v9 = vmul.f32 0.5, %v3162_v38 }
 0x18e   : > { %v3313_v60 = vmul.f32 0.5, %v3200_v20  ;;  %v763_v11 = vadd.f32 0.001143296, %v762_v7  ;;  %v914_v12 = vadd.f32 0.0036580483, %v913_v47  ;;  %v733_v31 = vmul.f32 %v3297_v52, %v3261_v53 }
 0x18f   : > { %v1387_v44 = vpack.c.bf16 %v1378_v14, %v1377_v23  ;;  %v991_v6 = vmul.f32 2.1237322e-06, %v3295_v46  ;;  %v803_v15 = vadd.f32 0.001143296, %v802_v0  ;;  %v839_v18 = vmul.f32 %v838_v19, %v3159_v37 }
 0x190   : > { %v1279_v2 = vmul.f32 %v1278_v61, %v3175_v51  ;;  %v764_v21 = vmul.f32 %v763_v11, %v3106_v28  ;;  %v842_v38 = vmul.f32 3.8918573e-05, %v3159_v37  ;;  %v1317_v22 = vmul.f32 %v1316_v59, %v3218_v40 }
 0x191   : > { %1495 = vmatmul.bf16.vlgmr.msra.gmra.mxu3 %v1387_v44  ;;  %v954_v20 = vadd.f32 0.0036580483, %v953_v63  ;;  %v1029_v13 = vmul.f32 %v3305_v25, %v3305_v25  ;;  %v804_v23 = vmul.f32 %v803_v15, %v3124_v49  ;;  %v3327_v14 = vmul.f32 %v760_v39, %v3080_v8 }
 0x192   : > { %v878_v30 = vadd.f32 0.18741608, %v877_v3  ;;  %v765_v32 = vadd.f32 0.014752088, %v764_v21  ;;  %v843_v29 = vadd.f32 0.001143296, %v842_v38  ;;  %v915_v27 = vmul.f32 %v914_v12, %v3248_v54 }
 0x193   : > { %v992_v44 = vadd.f32 0.00028619796, %v991_v6  ;;  %v734_v1 = vsub.f32 1.0, %v733_v31  ;;  %v805_v47 = vadd.f32 0.014752088, %v804_v23  ;;  %v955_v0 = vmul.f32 %v954_v20, %v3259_v48 }
 0x194   : > { %v840_v19 = vadd.f32 1.1283791, %v839_v18  ;;  %v3330_v61 = vadd.f32 1.1283791, %v1279_v2  ;;  %v766_v7 = vmul.f32 %v765_v32, %v3106_v28  ;;  %v844_v59 = vmul.f32 %v843_v29, %v3159_v37 }
 0x195   : > { %v1318_v63 = vadd.f32 0.18741608, %v1317_v22  ;;  %v3335_v8 = vmin.f32 %v1029_v13, 16.0  ;;  %v806_v39 = vmul.f32 %v805_v47, %v3124_v49  ;;  %v3339_v3 = vmul.f32 %v800_v45, %v3101_v24 }
 0x196   : > { %v767_v11 = vadd.f32 0.112945676, %v766_v7  ;;  %v845_v12 = vadd.f32 0.014752088, %v844_v59  ;;  %v1282_v6 = vmul.f32 3.8918573e-05, %v3175_v51  ;;  %v879_v31 = vmul.f32 %v878_v30, %v3195_v10 }
 0x197   : > { %v916_v15 = vadd.f32 0.05243302, %v915_v27  ;;  %v993_v18 = vmul.f32 %v992_v44, %v3295_v46  ;;  %v735_v2 = vmul.f32 %v3297_v52, %v734_v1  ;;  %v807_v38 = vadd.f32 0.112945676, %v806_v39 }
 0x198   : > { %v768_v21 = vmul.f32 %v767_v11, %v3106_v28  ;;  %v846_v22 = vmul.f32 %v845_v12, %v3159_v37  ;;  %v1283_v20 = vadd.f32 0.001143296, %v1282_v6  ;;  %v1319_v24 = vmul.f32 %v1318_v63, %v3218_v40  ;;  %v659_v12 = vpop.f32.mrf.mxu1 }
 0x199   : > { %v956_v45 = vadd.f32 0.05243302, %v955_v0  ;;  %v1031_v13 = vmul.f32 2.1237322e-06, %v3335_v8  ;;  %v1322_v23 = vmul.f32 3.8918573e-05, %v3218_v40  ;;  %v808_v30 = vmul.f32 %v807_v38, %v3124_v49 }
 0x19a   : > { %v769_v32 = vadd.f32 0.4994258, %v768_v21  ;;  %v847_v29 = vadd.f32 0.112945676, %v846_v22  ;;  %v1284_v27 = vmul.f32 %v1283_v20, %v3175_v51  ;;  %v994_v44 = vadd.f32 0.0036580483, %v993_v18 }
 0x19b   : > { %vm737_vm8 = vweird.f32 %v3261_v53  ;;  %vm738_vm9 = vweird.f32 %v3297_v52  ;;  %v743_v1 = vand.u32 2147483648, %v3261_v53  ;;  %v736_v47 = vadd.f32 %v3297_v52, %v735_v2 }
 0x19c   : > { %v770_v7 = vmul.f32 %v769_v32, %v3106_v28  ;;  %v809_v59 = vadd.f32 0.4994258, %v808_v30  ;;  %v848_v63 = vmul.f32 %v847_v29, %v3159_v37  ;;  %v917_v0 = vmul.f32 %v916_v15, %v3248_v54  ;;  %vm3369_vm10 = vmor %vm737_vm8, %vm738_vm9 }
 0x19d   : > { %v1032_v39 = vadd.f32 0.00028619796, %v1031_v13  ;;  %v741_v11 = vand.u32 2147483647, %v3261_v53  ;;  %v1285_v6 = vadd.f32 0.014752088, %v1284_v27  ;;  %v957_v18 = vmul.f32 %v956_v45, %v3259_v48 }
 0x19e   : > { %v3361_v21 = vadd.f32 1.0, %v770_v7  ;;  %v810_v38 = vmul.f32 %v809_v59, %v3124_v49  ;;  %v1323_v22 = vadd.f32 0.001143296, %v1322_v23  ;;  %v995_v2 = vmul.f32 %v994_v44, %v3295_v46 }
 0x19f   : > { %v744_v15 = vor.u32 1.1754944e-38, %v743_v1  ;;  %v849_v20 = vadd.f32 0.4994258, %v848_v63  ;;  %v1286_v13 = vmul.f32 %v1285_v6, %v3175_v51  ;;  %v740_v45 = vsel %vm3369_vm10, %v3297_v52, %v736_v47 }
 0x1a0   : > { %2842 = vrcp.f32 %v3361_v21  ;;  %v3379_v49 = vadd.f32 %v3052_v57, %v659_v12  ;;  %v882_v23 = vmul.f32 3.8918573e-05, %v3195_v10  ;;  %v1033_v53 = vmul.f32 %v1032_v39, %v3335_v8 }
 0x1a1   : > { %v3383_v32 = vadd.f32 1.0, %v810_v38  ;;  %v850_v30 = vmul.f32 %v849_v20, %v3159_v37  ;;  %v1287_v29 = vadd.f32 0.112945676, %v1286_v13  ;;  %v3387_v27 = vmul.f32 %v840_v19, %v3133_v62 }
 0x1a2   : > { %v880_v44 = vadd.f32 1.1283791, %v879_v31  ;;  %vm742_vm11 = vcmp.eq.f32.partialorder %v741_v11, 8.507059e+37  ;;  %v1324_v52 = vmul.f32 %v1323_v22, %v3218_v40  ;;  %v1320_v1 = vadd.f32 1.1283791, %v1319_v24 }
 0x1a3   : > { %v918_v47 = vadd.f32 0.18741608, %v917_v0  ;;  %v745_v7 = vsel %vm742_vm11, %v744_v15, %v740_v45  ;;  %2844 = vrcp.f32 %v3383_v32  ;;  %v3392_v59 = vmul.f32 0.70710677, %v3379_v49 }
 0x1a4   : > { %v3394_v63 = vadd.f32 1.0, %v850_v30  ;;  %v1288_v37 = vmul.f32 %v1287_v29, %v3175_v51  ;;  %v883_v39 = vadd.f32 0.001143296, %v882_v23  ;;  %v3399_v62 = vmul.f32 %v3330_v61, %v3145_v17 }
 0x1a5   : > { %v958_v19 = vadd.f32 0.18741608, %v957_v18  ;;  %v996_v31 = vadd.f32 0.05243302, %v995_v2  ;;  %v1034_v11 = vadd.f32 0.0036580483, %v1033_v53  ;;  %v3402_v0 = vmul.f32 %v880_v44, %v3166_v41  ;;  %v662_v44 = vpop.f32.mrf.mxu1 }
 0x1a6   : > { %v2843_v24 = vpop.eup %2842  ;;  %v746_v12 = vmul.f32 %v745_v7, %v3300_v58  ;;  %2846 = vrcp.f32 %v3394_v63  ;;  %v1325_v6 = vadd.f32 0.014752088, %v1324_v52  ;;  %v3407_v38 = vmul.f32 %v1320_v1, %v3184_v55 }
 0x1a7   : > { %v3410_v22 = vmul.f32 %v918_v47, %v3248_v54  ;;  %v773_v17 = vmul.f32 %v2843_v24, %v3361_v21  ;;  %v781_v61 = vand.u32 2147483647, %v3361_v21  ;;  %v783_v18 = vand.u32 2147483648, %v3361_v21 }
 0x1a8   : > { %v1069_v41 = vmul.f32 %v3392_v59, %v3392_v59  ;;  %v1289_v2 = vadd.f32 0.4994258, %v1288_v37  ;;  %v884_v58 = vmul.f32 %v883_v39, %v3195_v10  ;;  %v3419_v15 = vmul.f32 %v958_v19, %v3259_v48 }
 0x1a9   : > { %v2845_v28 = vpop.eup %2844  ;;  %v997_v55 = vmul.f32 %v996_v31, %v3295_v46  ;;  %v1035_v20 = vmul.f32 %v1034_v11, %v3335_v8  ;;  %v774_v13 = vsub.f32 1.0, %v773_v17  ;;  %v2590_v45 = vclamps-f32 %v746_v12, 1.0 }
 0x1aa   : > { %vm777_vm12 = vweird.f32 %v3361_v21  ;;  %v813_v23 = vmul.f32 %v2845_v28, %v3383_v32  ;;  %v1326_v53 = vmul.f32 %v1325_v6, %v3218_v40  ;;  %vm778_vm13 = vweird.f32 %v2843_v24 }
 0x1ab   : > { %v775_v30 = vmul.f32 %v2843_v24, %v774_v13  ;;  %vm3426_vm14 = vcmp.eq.f32.partialorder %v781_v61, 8.507059e+37  ;;  %v1290_v52 = vmul.f32 %v1289_v2, %v3175_v51  ;;  %v784_v47 = vor.u32 1.1754944e-38, %v783_v18  ;;  %vm779_vm0 = vmor %vm777_vm12, %vm778_vm13 }
 0x1ac   : > { %v2847_v1 = vpop.eup %2846  ;;  %v3431_v7 = vmin.f32 %v1069_v41, 16.0  ;;  %v814_v37 = vsub.f32 1.0, %v813_v23  ;;  %v885_v39 = vadd.f32 0.014752088, %v884_v58  ;;  %vm817_vm15 = vweird.f32 %v3383_v32 }
 0x1ad   : > { %v776_v19 = vadd.f32 %v2843_v24, %v775_v30  ;;  %v821_v31 = vand.u32 2147483647, %v3383_v32  ;;  %v853_v11 = vmul.f32 %v2847_v1, %v3394_v63  ;;  %v3439_v12 = vadd.f32 %v3052_v57, %v662_v44 }
 0x1ae   : > { %v815_v51 = vmul.f32 %v2845_v28, %v814_v37  ;;  %v823_v6 = vand.u32 2147483648, %v3383_v32  ;;  %v1327_v17 = vadd.f32 0.112945676, %v1326_v53  ;;  %vm818_vm1 = vweird.f32 %v2845_v28 }
 0x1af   : > { %v780_v61 = vsel %vm779_vm0, %v2843_v24, %v776_v19  ;;  %v854_v18 = vsub.f32 1.0, %v853_v11  ;;  %v3442_v41 = vadd.f32 1.0, %v1290_v52  ;;  %v861_v13 = vand.u32 2147483647, %v3394_v63  ;;  %vm3452_vm3 = vmor %vm817_vm15, %vm818_vm1 }
 0x1b0   : > { %v785_v2 = vsel %vm3426_vm14, %v784_v47, %v780_v61  ;;  %v816_v58 = vadd.f32 %v2845_v28, %v815_v51  ;;  %v863_v21 = vand.u32 2147483648, %v3394_v63  ;;  %vm858_vm2 = vweird.f32 %v2847_v1 }
 0x1b1   : > { %v786_v23 = vmul.f32 %v785_v2, %v3327_v14  ;;  %v855_v30 = vmul.f32 %v2847_v1, %v854_v18  ;;  %2848 = vrcp.f32 %v3442_v41  ;;  %v998_v53 = vadd.f32 0.18741608, %v997_v55 }
 0x1b2   : > { %v1349_v24 = vadd.f32 1.0, %v2590_v45  ;;  %vm857_vm4 = vweird.f32 %v3394_v63  ;;  %v886_v29 = vmul.f32 %v885_v39, %v3195_v10  ;;  %v820_v14 = vsel %vm3452_vm3, %v2845_v28, %v816_v58 }
 0x1b3   : > { %v2591_v52 = vclamps-f32 %v786_v23, 1.0  ;;  %v856_v47 = vadd.f32 %v2847_v1, %v855_v30  ;;  %v1328_v37 = vmul.f32 %v1327_v17, %v3218_v40  ;;  %v1071_v55 = vmul.f32 2.1237322e-06, %v3431_v7  ;;  %vm859_vm6 = vmor %vm857_vm4, %vm858_vm2 }
 0x1b4   : > { %vm822_vm5 = vcmp.eq.f32.partialorder %v821_v31, 8.507059e+37  ;;  %v824_v45 = vor.u32 1.1754944e-38, %v823_v6  ;;  %v864_v32 = vor.u32 1.1754944e-38, %v863_v21  ;;  %v3463_v11 = vmul.f32 0.70710677, %v3439_v12 }
 0x1b5   : > { %v1350_v19 = vadd.f32 1.0, %v2591_v52  ;;  %v860_v63 = vsel %vm859_vm6, %v2847_v1, %v856_v47  ;;  %vm862_vm7 = vcmp.eq.f32.partialorder %v861_v13, 8.507059e+37  ;;  %v1036_v39 = vadd.f32 0.05243302, %v1035_v20 }
 0x1b6   : > { %v1365_v51 = vmul.f32 %v1349_v24, %v3169_v42  ;;  %v825_v61 = vsel %vm822_vm5, %v824_v45, %v820_v14  ;;  %v865_v28 = vsel %vm862_vm7, %v864_v32, %v860_v63  ;;  %v1329_v31 = vadd.f32 0.4994258, %v1328_v37 }
 0x1b7   : > { %v2849_v18 = vpop.eup %2848  ;;  %v1366_v17 = vmul.f32 %v1350_v19, %v3192_v4  ;;  %v866_v2 = vmul.f32 %v865_v28, %v3387_v27  ;;  %v887_v6 = vadd.f32 0.112945676, %v886_v29  ;;  %v920_v58 = vadd.f32 1.1283791, %v3410_v22 }
 0x1b8   : > { %v960_v21 = vadd.f32 1.1283791, %v3419_v15  ;;  %v1072_v23 = vadd.f32 0.00028619796, %v1071_v55  ;;  %v1293_v1 = vmul.f32 %v2849_v18, %v3442_v41  ;;  %v999_v20 = vmul.f32 %v998_v53, %v3295_v46  ;;  %v664_v15 = vpop.f32.mrf.mxu1 }
 0x1b9   : > { %v1381_v13 = vpack.c.bf16 %v1366_v17, %v1365_v51  ;;  %v1109_v42 = vmul.f32 %v3463_v11, %v3463_v11  ;;  %v826_v30 = vmul.f32 %v825_v61, %v3339_v3  ;;  %v1037_v4 = vmul.f32 %v1036_v39, %v3335_v8 }
 0x1ba   : > { %v1294_v27 = vsub.f32 1.0, %v1293_v1  ;;  %vm1297_vm8 = vweird.f32 %v3442_v41  ;;  %vm1298_vm9 = vweird.f32 %v2849_v18  ;;  %v2593_v22 = vclamps-f32 %v866_v2, 1.0 }
 0x1bb   : > { %1465 = vmatmul.bf16.vlgmr.msra.gmra.mxu2 %v1381_v13  ;;  %v1303_v24 = vand.u32 2147483648, %v3442_v41  ;;  %v1330_v44 = vmul.f32 %v1329_v31, %v3218_v40  ;;  %v888_v53 = vmul.f32 %v887_v6, %v3195_v10  ;;  %v1073_v29 = vmul.f32 %v1072_v23, %v3431_v7  ;;  %vm3485_vm10 = vmor %vm1297_vm8, %vm1298_vm9 }
 0x1bc   : > { %v1295_v52 = vmul.f32 %v2849_v18, %v1294_v27  ;;  %v1301_v3 = vand.u32 2147483647, %v3442_v41  ;;  %v922_v14 = vmul.f32 3.8918573e-05, %v3248_v54  ;;  %v3483_v47 = vmin.f32 %v1109_v42, 16.0 }
 0x1bd   : > { %v2592_v37 = vclamps-f32 %v826_v30, 1.0  ;;  %v1331_v45 = vadd.f32 1.0, %v1330_v44  ;;  %v889_v32 = vadd.f32 0.4994258, %v888_v53  ;;  %v3490_v40 = vadd.f32 %v3052_v57, %v664_v15 }
 0x1be   : > { %v1296_v19 = vadd.f32 %v2849_v18, %v1295_v52  ;;  %v923_v63 = vadd.f32 0.001143296, %v922_v14  ;;  %v962_v39 = vmul.f32 3.8918573e-05, %v3259_v48  ;;  %v3494_v41 = vmul.f32 %v920_v58, %v3221_v43 }
 0x1bf   : > { %v1352_v51 = vadd.f32 1.0, %v2593_v22  ;;  %v1304_v61 = vor.u32 1.1754944e-38, %v1303_v24  ;;  %2850 = vrcp.f32 %v1331_v45  ;;  %v3496_v28 = vadd.f32 1.1283791, %v999_v20 }
 0x1c0   : > { %v1074_v17 = vadd.f32 0.0036580483, %v1073_v29  ;;  %v1300_v2 = vsel %vm3485_vm10, %v2849_v18, %v1296_v19  ;;  %vm1302_vm11 = vcmp.eq.f32.partialorder %v1301_v3, 8.507059e+37  ;;  %v1111_v57 = vmul.f32 2.1237322e-06, %v3483_v47 }
 0x1c1   : > { %v1351_v31 = vadd.f32 1.0, %v2592_v37  ;;  %v890_v6 = vmul.f32 %v889_v32, %v3195_v10  ;;  %v924_v23 = vmul.f32 %v923_v63, %v3248_v54  ;;  %v3504_v43 = vmul.f32 %v960_v21, %v3231_v56 }
 0x1c2   : > { %v3506_v58 = vadd.f32 0.18741608, %v1037_v4  ;;  %v3509_v1 = vmul.f32 0.70710677, %v3490_v40  ;;  %v963_v20 = vadd.f32 0.001143296, %v962_v39  ;;  %v1368_v13 = vmul.f32 %v1352_v51, %v3282_v33 }
 0x1c3   : > { %v1305_v18 = vsel %vm1302_vm11, %v1304_v61, %v1300_v2  ;;  %v3512_v42 = vadd.f32 1.0, %v890_v6  ;;  %v925_v30 = vadd.f32 0.014752088, %v924_v23  ;;  %v3515_v27 = vmul.f32 %v1074_v17, %v3431_v7 }
 0x1c4   : > { %v1341_v10 = vand.u32 2147483647, %v1331_v45  ;;  %v964_v22 = vmul.f32 %v963_v20, %v3259_v48  ;;  %v1002_v56 = vmul.f32 3.8918573e-05, %v3295_v46  ;;  %v3519_v4 = vadd.f32 0.00028619796, %v1111_v57 }
 0x1c5   : > { %v2851_v21 = vpop.eup %2850  ;;  %v1367_v15 = vmul.f32 %v1351_v31, %v3269_v5  ;;  %2852 = vrcp.f32 %v3512_v42  ;;  %v1042_v33 = vmul.f32 3.8918573e-05, %v3335_v8  ;;  %v3526_v24 = vmul.f32 %v3509_v1, %v3509_v1 }
 0x1c6   : > { %v1306_v44 = vmul.f32 %v1305_v18, %v3399_v62  ;;  %v1333_v53 = vmul.f32 %v2851_v21, %v1331_v45  ;;  %v1343_v29 = vand.u32 2147483648, %v1331_v45  ;;  %vm1337_vm12 = vweird.f32 %v1331_v45 }
 0x1c7   : > { %v1382_v52 = vpack.c.bf16 %v1368_v13, %v1367_v15  ;;  %v926_v3 = vmul.f32 %v925_v30, %v3248_v54  ;;  %v965_v14 = vadd.f32 0.014752088, %v964_v22  ;;  %vm1338_vm13 = vweird.f32 %v2851_v21 }
 0x1c8   : > { %v1334_v37 = vsub.f32 1.0, %v1333_v53  ;;  %vm3530_vm14 = vcmp.eq.f32.partialorder %v1341_v10, 8.507059e+37  ;;  %v1003_v55 = vadd.f32 0.001143296, %v1002_v56  ;;  %v1043_v63 = vadd.f32 0.001143296, %v1042_v33  ;;  %vm3540_vm15 = vmor %vm1337_vm12, %vm1338_vm13 }
 0x1c9   : > { %v927_v32 = vadd.f32 0.112945676, %v926_v3  ;;  %v966_v19 = vmul.f32 %v965_v14, %v3259_v48  ;;  %v1082_v62 = vmul.f32 3.8918573e-05, %v3431_v7  ;;  %v2604_v39 = vclamps-f32 %v1306_v44, 1.0 }
 0x1ca   : > { %v1335_v51 = vmul.f32 %v2851_v21, %v1334_v37  ;;  %v1344_v61 = vor.u32 1.1754944e-38, %v1343_v29  ;;  %v1004_v17 = vmul.f32 %v1003_v55, %v3295_v46  ;;  %v1044_v23 = vmul.f32 %v1043_v63, %v3335_v8 }
 0x1cb   : > { %v3537_v2 = vpop.eup %2852  ;;  %1470 = vmatmul.bf16.gmra.mxu2 %v1382_v52  ;;  %v928_v31 = vmul.f32 %v927_v32, %v3248_v54  ;;  %v967_v6 = vadd.f32 0.112945676, %v966_v19  ;;  %v1083_v20 = vadd.f32 0.001143296, %v1082_v62  ;;  %vm897_vm0 = vweird.f32 %v3512_v42 }
 0x1cc   : > { %v1336_v13 = vadd.f32 %v2851_v21, %v1335_v51  ;;  %v893_v18 = vmul.f32 %v3537_v2, %v3512_v42  ;;  %v1005_v30 = vadd.f32 0.014752088, %v1004_v17  ;;  %v1045_v22 = vadd.f32 0.014752088, %v1044_v23 }
 0x1cd   : > { %v929_v10 = vadd.f32 0.4994258, %v928_v31  ;;  %v968_v45 = vmul.f32 %v967_v6, %v3259_v48  ;;  %v1084_v56 = vmul.f32 %v1083_v20, %v3431_v7  ;;  %v1122_v53 = vmul.f32 3.8918573e-05, %v3483_v47 }
 0x1ce   : > { %v1340_v15 = vsel %vm3540_vm15, %v2851_v21, %v1336_v13  ;;  %v894_v33 = vsub.f32 1.0, %v893_v18  ;;  %v1006_v44 = vmul.f32 %v1005_v30, %v3295_v46  ;;  %v1046_v14 = vmul.f32 %v1045_v22, %v3335_v8 }
 0x1cf   : > { %v1345_v29 = vsel %vm3530_vm14, %v1344_v61, %v1340_v15  ;;  %v930_v52 = vmul.f32 %v929_v10, %v3248_v54  ;;  %v969_v3 = vadd.f32 0.4994258, %v968_v45  ;;  %v1085_v19 = vadd.f32 0.014752088, %v1084_v56 }
 0x1d0   : > { %v1346_v37 = vmul.f32 %v1345_v29, %v3407_v38  ;;  %v895_v55 = vmul.f32 %v3537_v2, %v894_v33  ;;  %v1007_v32 = vadd.f32 0.112945676, %v1006_v44  ;;  %v1363_v21 = vadd.f32 1.0, %v2604_v39 }
 0x1d1   : > { %v3561_v63 = vadd.f32 1.0, %v930_v52  ;;  %v970_v62 = vmul.f32 %v969_v3, %v3259_v48  ;;  %v1047_v51 = vadd.f32 0.112945676, %v1046_v14  ;;  %vm898_vm1 = vweird.f32 %v3537_v2 }
 0x1d2   : > { %v2605_v17 = vclamps-f32 %v1346_v37, 1.0  ;;  %v896_v5 = vadd.f32 %v3537_v2, %v895_v55  ;;  %v1008_v54 = vmul.f32 %v1007_v32, %v3295_v46  ;;  %v901_v61 = vand.u32 2147483647, %v3512_v42  ;;  %vm3583_vm2 = vmor %vm897_vm0, %vm898_vm1 }
 0x1d3   : > { %v903_v38 = vand.u32 2147483648, %v3512_v42  ;;  %2854 = vrcp.f32 %v3561_v63  ;;  %v1123_v57 = vadd.f32 0.001143296, %v1122_v53  ;;  %v3570_v31 = vadd.f32 1.0, %v970_v62 }
 0x1d4   : > { %v1364_v39 = vadd.f32 1.0, %v2605_v17  ;;  %v1009_v6 = vadd.f32 0.4994258, %v1008_v54  ;;  %v1086_v48 = vmul.f32 %v1085_v19, %v3431_v7  ;;  %v3575_v23 = vmul.f32 %v3496_v28, %v3266_v16 }
 0x1d5   : > { %v1076_v20 = vadd.f32 0.05243302, %v3515_v27  ;;  %v3579_v13 = vmin.f32 %v3526_v24, 16.0  ;;  %v1048_v30 = vmul.f32 %v1047_v51, %v3335_v8  ;;  %v1379_v10 = vmul.f32 %v1363_v21, %v3289_v26 }
 0x1d6   : > { %v1380_v45 = vmul.f32 %v1364_v39, %v3310_v9  ;;  %v900_v16 = vsel %vm3583_vm2, %v3537_v2, %v896_v5  ;;  %2856 = vrcp.f32 %v3570_v31  ;;  %v904_v28 = vor.u32 1.1754944e-38, %v903_v38 }
 0x1d7   : > { %v1010_v27 = vmul.f32 %v1009_v6, %v3295_v46  ;;  %v1049_v42 = vadd.f32 0.4994258, %v1048_v30  ;;  %v1124_v24 = vmul.f32 %v1123_v57, %v3483_v47  ;;  %v1113_v22 = vmul.f32 %v3519_v4, %v3483_v47 }
 0x1d8   : > { %v1388_v56 = vpack.c.bf16 %v1380_v45, %v1379_v10  ;;  %vm902_vm3 = vcmp.eq.f32.partialorder %v901_v61, 8.507059e+37  ;;  %v1087_v26 = vadd.f32 0.112945676, %v1086_v48  ;;  %v1151_v9 = vmul.f32 2.1237322e-06, %v3579_v13 }
 0x1d9   : > { %v2855_v15 = vpop.eup %2854  ;;  %v905_v33 = vsel %vm902_vm3, %v904_v28, %v900_v16  ;;  %v3599_v44 = vadd.f32 1.0, %v1010_v27  ;;  %v1050_v2 = vmul.f32 %v1049_v42, %v3335_v8  ;;  %v3604_v46 = vmul.f32 %v3506_v58, %v3335_v8 }
 0x1da   : > { %1500 = vmatmul.bf16.gmra.mxu3 %v1388_v56  ;;  %v933_v53 = vmul.f32 %v2855_v15, %v3561_v63  ;;  %v941_v4 = vand.u32 2147483647, %v3561_v63  ;;  %v1088_v29 = vmul.f32 %v1087_v26, %v3431_v7  ;;  %v3610_v52 = vmul.f32 %v1076_v20, %v3431_v7 }
 0x1db   : > { %v943_v3 = vand.u32 2147483648, %v3561_v63  ;;  %2858 = vrcp.f32 %v3599_v44  ;;  %v1125_v14 = vadd.f32 0.014752088, %v1124_v24  ;;  %v906_v55 = vmul.f32 %v905_v33, %v3402_v0 }
 0x1dc   : > { %v2857_v37 = vpop.eup %2856  ;;  %v934_v8 = vsub.f32 1.0, %v933_v53  ;;  %v3615_v58 = vadd.f32 1.0, %v1050_v2  ;;  %v1089_v32 = vadd.f32 0.4994258, %v1088_v29  ;;  %v3617_v19 = vadd.f32 0.0036580483, %v1113_v22 }
 0x1dd   : > { %v1152_v21 = vadd.f32 0.00028619796, %v1151_v9  ;;  %vm937_vm4 = vweird.f32 %v3561_v63  ;;  %v973_v62 = vmul.f32 %v2857_v37, %v3570_v31  ;;  %vm938_vm5 = vweird.f32 %v2855_v15 }
 0x1de   : > { %v935_v51 = vmul.f32 %v2855_v15, %v934_v8  ;;  %vm3621_vm6 = vcmp.eq.f32.partialorder %v941_v4, 8.507059e+37  ;;  %2860 = vrcp.f32 %v3615_v58  ;;  %v983_v5 = vand.u32 2147483648, %v3570_v31  ;;  %vm939_vm7 = vmor %vm937_vm4, %vm938_vm5 }
 0x1df   : > { %v974_v0 = vsub.f32 1.0, %v973_v62  ;;  %v1090_v54 = vmul.f32 %v1089_v32, %v3431_v7  ;;  %v1126_v61 = vmul.f32 %v1125_v14, %v3483_v47  ;;  %v2594_v38 = vclamps-f32 %v906_v55, 1.0 }
 0x1e0   : > { %v936_v57 = vadd.f32 %v2855_v15, %v935_v51  ;;  %v944_v39 = vor.u32 1.1754944e-38, %v943_v3  ;;  %v1162_v6 = vmul.f32 3.8918573e-05, %v3579_v13  ;;  %vm978_vm8 = vweird.f32 %v2857_v37 }
 0x1e1   : > { %v2859_v48 = vpop.eup %2858  ;;  %v975_v20 = vmul.f32 %v2857_v37, %v974_v0  ;;  %v3632_v18 = vadd.f32 1.0, %v1090_v54  ;;  %v1127_v30 = vadd.f32 0.112945676, %v1126_v61  ;;  %vm977_vm9 = vweird.f32 %v3570_v31 }
 0x1e2   : > { %v940_v10 = vsel %vm939_vm7, %v2855_v15, %v936_v57  ;;  %v981_v45 = vand.u32 2147483647, %v3570_v31  ;;  %v1013_v16 = vmul.f32 %v2859_v48, %v3599_v44  ;;  %v984_v42 = vor.u32 1.1754944e-38, %v983_v5  ;;  %vm3643_vm10 = vmor %vm977_vm9, %vm978_vm8 }
 0x1e3   : > { %v945_v28 = vsel %vm3621_vm6, %v944_v39, %v940_v10  ;;  %v976_v27 = vadd.f32 %v2857_v37, %v975_v20  ;;  %2862 = vrcp.f32 %v3632_v18  ;;  %v1353_v22 = vadd.f32 1.0, %v2594_v38 }
 0x1e4   : > { %v3640_v63 = vpop.eup %2860  ;;  %v946_v24 = vmul.f32 %v945_v28, %v3494_v41  ;;  %v1014_v26 = vsub.f32 1.0, %v1013_v16  ;;  %v1163_v31 = vadd.f32 0.001143296, %v1162_v6  ;;  %v1021_v9 = vand.u32 2147483647, %v3599_v44 }
 0x1e5   : > { %v980_v15 = vsel %vm3643_vm10, %v2857_v37, %v976_v27  ;;  %v1023_v33 = vand.u32 2147483648, %v3599_v44  ;;  %v1128_v2 = vmul.f32 %v1127_v30, %v3483_v47  ;;  %vm1018_vm11 = vweird.f32 %v2859_v48 }
 0x1e6   : > { %v2595_v53 = vclamps-f32 %v946_v24, 1.0  ;;  %v1015_v4 = vmul.f32 %v2859_v48, %v1014_v26  ;;  %v1053_v41 = vmul.f32 %v3640_v63, %v3615_v58  ;;  %v1153_v29 = vmul.f32 %v1152_v21, %v3579_v13 }
 0x1e7   : > { %vm982_vm12 = vcmp.eq.f32.partialorder %v981_v45, 8.507059e+37  ;;  %vm1017_vm13 = vweird.f32 %v3599_v44  ;;  %v1129_v3 = vadd.f32 0.4994258, %v1128_v2  ;;  %v1164_v8 = vmul.f32 %v1163_v31, %v3579_v13 }
 0x1e8   : > { %v1354_v14 = vadd.f32 1.0, %v2595_v53  ;;  %v985_v37 = vsel %vm982_vm12, %v984_v42, %v980_v15  ;;  %v1016_v55 = vadd.f32 %v2859_v48, %v1015_v4  ;;  %v1369_v62 = vmul.f32 %v1353_v22, %v3292_v50  ;;  %vm1019_vm14 = vmor %vm1017_vm13, %vm1018_vm11 }
 0x1e9   : > { %v2863_v32 = vpop.eup %2862  ;;  %vm1022_vm15 = vcmp.eq.f32.partialorder %v1021_v9, 8.507059e+37  ;;  %v1024_v51 = vor.u32 1.1754944e-38, %v1023_v33  ;;  %v1130_v17 = vmul.f32 %v1129_v3, %v3483_v47  ;;  %v1054_v5 = vsub.f32 1.0, %v1053_v41 }
 0x1ea   : > { %v1370_v0 = vmul.f32 %v1354_v14, %v3313_v60  ;;  %v1020_v21 = vsel %vm1019_vm14, %v2859_v48, %v1016_v55  ;;  %v1093_v44 = vmul.f32 %v2863_v32, %v3632_v18  ;;  %v1078_v54 = vadd.f32 0.18741608, %v3610_v52 }
 0x1eb   : > { %v986_v61 = vmul.f32 %v985_v37, %v3504_v43  ;;  %v1025_v38 = vsel %vm1022_vm15, %v1024_v51, %v1020_v21  ;;  %v3663_v57 = vadd.f32 1.0, %v1130_v17  ;;  %v1165_v20 = vadd.f32 0.014752088, %v1164_v8 }
 0x1ec   : > { %v1383_v39 = vpack.c.bf16 %v1370_v0, %v1369_v62  ;;  %v1026_v50 = vmul.f32 %v1025_v38, %v3575_v23  ;;  %v1094_v6 = vsub.f32 1.0, %v1093_v44  ;;  %v1154_v30 = vadd.f32 0.0036580483, %v1153_v29 }
 0x1ed   : > { %2864 = vrcp.f32 %v3663_v57  ;;  %v1115_v60 = vmul.f32 %v3617_v19, %v3483_v47  ;;  %v1055_v52 = vmul.f32 %v3640_v63, %v1054_v5  ;;  %v684_v43 = vmul.f32 0.5, %v3251_v34 }
 0x1ee   : > { %1475 = vmatmul.bf16.gmra.mxu2 %v1383_v39  ;;  %v2597_v48 = vclamps-f32 %v1026_v50, 1.0  ;;  %v1095_v10 = vmul.f32 %v2863_v32, %v1094_v6  ;;  %v1079_v45 = vmul.f32 %v1078_v54, %v3431_v7  ;;  %vm1098_vm0 = vweird.f32 %v2863_v32 }
 0x1ef   : > { %v1166_v23 = vmul.f32 %v1165_v20, %v3579_v13  ;;  %v1040_v16 = vadd.f32 1.1283791, %v3604_v46  ;;  %v2596_v28 = vclamps-f32 %v986_v61, 1.0  ;;  %v1103_v42 = vand.u32 2147483648, %v3632_v18 }
 0x1f0   : > { %v1096_v27 = vadd.f32 %v2863_v32, %v1095_v10  ;;  %v1155_v19 = vmul.f32 %v1154_v30, %v3579_v13  ;;  %vm1097_vm1 = vweird.f32 %v3632_v18  ;;  %v1101_v24 = vand.u32 2147483647, %v3632_v18 }
 0x1f1   : > { %v1167_v22 = vadd.f32 0.112945676, %v1166_v23  ;;  %v1116_v56 = vadd.f32 0.05243302, %v1115_v60  ;;  %v1356_v34 = vadd.f32 1.0, %v2597_v48  ;;  %v1056_v7 = vadd.f32 %v3640_v63, %v1055_v52  ;;  %vm3680_vm3 = vmor %vm1097_vm1, %vm1098_vm0 }
 0x1f2   : > { %vm1058_vm2 = vweird.f32 %v3640_v63  ;;  %v1080_v31 = vadd.f32 1.1283791, %v1079_v45  ;;  %v1063_v15 = vand.u32 2147483648, %v3615_v58  ;;  %v1100_v9 = vsel %vm3680_vm3, %v2863_v32, %v1096_v27 }
 0x1f3   : > { %v3684_v46 = vpop.eup %2864  ;;  %v1168_v18 = vmul.f32 %v1167_v22, %v3579_v13  ;;  %v1355_v33 = vadd.f32 1.0, %v2596_v28  ;;  %vm1057_vm4 = vweird.f32 %v3615_v58  ;;  %v1061_v2 = vand.u32 2147483647, %v3615_v58 }
 0x1f4   : > { %v1104_v53 = vor.u32 1.1754944e-38, %v1103_v42  ;;  %v683_v4 = vmul.f32 0.5, %v3213_v35  ;;  %v1156_v41 = vadd.f32 0.05243302, %v1155_v19  ;;  %vm1059_vm5 = vmor %vm1057_vm4, %vm1058_vm2  ;;  %vm1102_vm6 = vcmp.eq.f32.partialorder %v1101_v24, 8.507059e+37 }
 0x1f5   : > { %v1169_v29 = vadd.f32 0.4994258, %v1168_v18  ;;  %v1372_v3 = vmul.f32 %v1356_v34, %v684_v43  ;;  %v1060_v14 = vsel %vm1059_vm5, %v3640_v63, %v1056_v7  ;;  %v1133_v55 = vmul.f32 %v3684_v46, %v3663_v57 }
 0x1f6   : > { %v1105_v37 = vsel %vm1102_vm6, %v1104_v53, %v1100_v9  ;;  %v1081_v8 = vmul.f32 %v1080_v31, %v3392_v59  ;;  %v1064_v32 = vor.u32 1.1754944e-38, %v1063_v15  ;;  %v1117_v58 = vmul.f32 %v1116_v56, %v3483_v47 }
 0x1f7   : > { %v1170_v62 = vmul.f32 %v1169_v29, %v3579_v13  ;;  %v1371_v51 = vmul.f32 %v1355_v33, %v683_v4  ;;  %vm1062_vm7 = vcmp.eq.f32.partialorder %v1061_v2, 8.507059e+37  ;;  %v1157_v35 = vmul.f32 %v1156_v41, %v3579_v13 }
 0x1f8   : > { %v1065_v17 = vsel %vm1062_vm7, %v1064_v32, %v1060_v14  ;;  %v1106_v0 = vmul.f32 %v1105_v37, %v1081_v8  ;;  %v1041_v63 = vmul.f32 %v1040_v16, %v3305_v25  ;;  %v1134_v44 = vsub.f32 1.0, %v1133_v55 }
 0x1f9   : > { %v1171_v21 = vadd.f32 1.0, %v1170_v62  ;;  %v1384_v5 = vpack.c.bf16 %v1372_v3, %v1371_v51  ;;  %v1118_v61 = vadd.f32 0.18741608, %v1117_v58  ;;  %v1158_v59 = vadd.f32 0.18741608, %v1157_v35 }
 0x1fa   : > { %v1066_v54 = vmul.f32 %v1065_v17, %v1041_v63  ;;  %v2599_v38 = vclamps-f32 %v1106_v0, 1.0  ;;  %v1135_v39 = vmul.f32 %v3684_v46, %v1134_v44  ;;  %vm1138_vm8 = vweird.f32 %v3684_v46 }
 0x1fb   : > { %2866 = vrcp.f32 %v1171_v21  ;;  %v1119_v20 = vmul.f32 %v1118_v61, %v3483_v47  ;;  %v1159_v30 = vmul.f32 %v1158_v59, %v3579_v13  ;;  %v685_v52 = vmul.f32 0.5, %v3286_v36 }
 0x1fc   : > { %v2598_v50 = vclamps-f32 %v1066_v54, 1.0  ;;  %v1358_v60 = vadd.f32 1.0, %v2599_v38  ;;  %v1136_v48 = vadd.f32 %v3684_v46, %v1135_v39  ;;  %v686_v10 = vmul.f32 0.5, %v3379_v49 }
 0x1fd   : > { %v1143_v43 = vand.u32 2147483648, %v3663_v57  ;;  %vm1137_vm9 = vweird.f32 %v3663_v57  ;;  %v1141_v23 = vand.u32 2147483647, %v3663_v57  ;;  %v1120_v16 = vadd.f32 1.1283791, %v1119_v20 }
 0x1fe   : > { %1480 = vmatmul.bf16.gmra.mxu2 %v1384_v5  ;;  %v1357_v45 = vadd.f32 1.0, %v2598_v50  ;;  %v1160_v13 = vadd.f32 1.1283791, %v1159_v30  ;;  %v1374_v28 = vmul.f32 %v1358_v60, %v686_v10  ;;  %vm1139_vm10 = vmor %vm1137_vm9, %vm1138_vm8  ;;  %v1183_v27 = vand.u32 2147483648, %v1171_v21 }
 0x1ff   : > { %v1140_v42 = vsel %vm1139_vm10, %v3684_v46, %v1136_v48  ;;  %v1181_v36 = vand.u32 2147483647, %v1171_v21  ;;  %v1144_v24 = vor.u32 1.1754944e-38, %v1143_v43  ;;  %vm1142_vm12 = vcmp.eq.f32.partialorder %v1141_v23, 8.507059e+37 }
 0x200   : > { %v1373_v49 = vmul.f32 %v1357_v45, %v685_v52  ;;  %vm1177_vm13 = vweird.f32 %v1171_v21  ;;  %v1121_v56 = vmul.f32 %v1120_v16, %v3463_v11  ;;  %v1184_v57 = vor.u32 1.1754944e-38, %v1183_v27 }
 0x201   : > { %v2867_v6 = vpop.eup %2866  ;;  %v1145_v34 = vsel %vm1142_vm12, %v1144_v24, %v1140_v42  ;;  %v1161_v7 = vmul.f32 %v1160_v13, %v3509_v1  ;;  %vm1182_vm15 = vcmp.eq.f32.partialorder %v1181_v36, 8.507059e+37  ;;  %v688_v53 = vmul.f32 0.5, %v3490_v40  ;;  %v3717_v1 = vld [vmem:[%s2988_s20] ss:$0 sm:$0xff] }
 0x202   : > { %v1173_v25 = vmul.f32 %v2867_v6, %v1171_v21  ;;  %vm1178_vm11 = vweird.f32 %v2867_v6  ;;  %v1385_v26 = vpack.c.bf16 %v1374_v28, %v1373_v49  ;;  %v1146_v15 = vmul.f32 %v1145_v34, %v1121_v56 }
 0x203   : > { %vm1179_vm14 = vmor %vm1177_vm13, %vm1178_vm11  ;;  %v687_v11 = vmul.f32 0.5, %v3439_v12 }
 0x204   : > { %v1174_v47 = vsub.f32 1.0, %v1173_v25  ;;  %v2600_v33 = vclamps-f32 %v1146_v15, 1.0 }
 0x206   : > { %v1175_v19 = vmul.f32 %v2867_v6, %v1174_v47  ;;  %v1359_v4 = vadd.f32 1.0, %v2600_v33 }
 0x208   : > { %v1176_v22 = vadd.f32 %v2867_v6, %v1175_v19  ;;  %v1375_v29 = vmul.f32 %v1359_v4, %v687_v11 }
 0x20a   : > { %v1180_v31 = vsel %vm1179_vm14, %v2867_v6, %v1176_v22 }
 0x20b   : > { %v1185_v46 = vsel %vm1182_vm15, %v1184_v57, %v1180_v31 }
 0x20c   : > { %v1186_v9 = vmul.f32 %v1185_v46, %v1161_v7 }
 0x20e   : > { %1485 = vmatmul.bf16.gmra.mxu2 %v1385_v26  ;;  %v2601_v18 = vclamps-f32 %v1186_v9, 1.0 }
 0x210   : > { %v1360_v2 = vadd.f32 1.0, %v2601_v18 }
 0x212   : > { %v1376_v41 = vmul.f32 %v1360_v2, %v688_v53 }
 0x214   : > { %v1386_v3 = vpack.c.bf16 %v1376_v41, %v1375_v29  ;;  %v1496_v14 = vpop.f32.mrf.mxu3 }
 0x215   : > { %v3720_v55 = vadd.f32 %v3717_v1, %v1496_v14 }
 0x217   : > { %v3726_v32 = vmul.f32 0.70710677, %v3720_v55 }
 0x219   : > { %v2018_v12 = vmul.f32 %v3726_v32, %v3726_v32 }
 0x21b   : > { %v2019_v58 = vmin.f32 %v2018_v12, 16.0 }
 0x21c   : > { %v1498_v35 = vpop.f32.mrf.mxu3 }
 0x21d   : > { %v2020_v0 = vmul.f32 2.1237322e-06, %v2019_v58  ;;  %v2031_v21 = vmul.f32 3.8918573e-05, %v2019_v58  ;;  %v3736_v63 = vadd.f32 %v3717_v1, %v1498_v35 }
 0x21e   : > { %1490 = vmatmul.bf16.gmra.mxu2 %v1386_v3 }
 0x21f   : > { %v2021_v61 = vadd.f32 0.00028619796, %v2020_v0  ;;  %v2032_v59 = vadd.f32 0.001143296, %v2031_v21  ;;  %v3745_v30 = vmul.f32 0.70710677, %v3736_v63 }
 0x221   : > { %v2022_v6 = vmul.f32 %v2021_v61, %v2019_v58  ;;  %v2033_v20 = vmul.f32 %v2032_v59, %v2019_v58  ;;  %v2058_v43 = vmul.f32 %v3745_v30, %v3745_v30 }
 0x223   : > { %v2023_v52 = vadd.f32 0.0036580483, %v2022_v6  ;;  %v2034_v10 = vadd.f32 0.014752088, %v2033_v20  ;;  %v3756_v36 = vmin.f32 %v2058_v43, 16.0 }
 0x225   : > { %v2024_v16 = vmul.f32 %v2023_v52, %v2019_v58  ;;  %v2035_v13 = vmul.f32 %v2034_v10, %v2019_v58  ;;  %v2060_v4 = vmul.f32 2.1237322e-06, %v3756_v36  ;;  %v3786_v52 = vmul.f32 0.5, %v3720_v55 }
 0x227   : > { %v2025_v22 = vadd.f32 0.05243302, %v2024_v16  ;;  %v2036_v57 = vadd.f32 0.112945676, %v2035_v13  ;;  %v2061_v59 = vadd.f32 0.00028619796, %v2060_v4 }
 0x229   : > { %v2026_v31 = vmul.f32 %v2025_v22, %v2019_v58  ;;  %v2037_v9 = vmul.f32 %v2036_v57, %v2019_v58  ;;  %v2062_v10 = vmul.f32 %v2061_v59, %v3756_v36 }
 0x22b   : > { %v2027_v53 = vadd.f32 0.18741608, %v2026_v31  ;;  %v2038_v29 = vadd.f32 0.4994258, %v2037_v9 }
 0x22d   : > { %v2028_v12 = vmul.f32 %v2027_v53, %v2019_v58 }
 0x22f   : > { %v2029_v6 = vadd.f32 1.1283791, %v2028_v12 }
 0x231   : > { %v3791_v13 = vmul.f32 %v2029_v6, %v3726_v32 }
 0x23e   : > { %v1466_v37 = vpop.f32.mrf.mxu2 }
 0x23f   : > { %v3723_v8 = vadd.f32 %v3717_v1, %v1466_v37 }
 0x241   : > { %v3729_v40 = vmul.f32 0.70710677, %v3723_v8 }
 0x243   : > { %v1538_v62 = vmul.f32 %v3729_v40, %v3729_v40 }
 0x245   : > { %v1539_v51 = vmin.f32 %v1538_v62, 16.0 }
 0x246   : > { %v1468_v17 = vpop.f32.mrf.mxu2 }
 0x247   : > { %v1540_v5 = vmul.f32 2.1237322e-06, %v1539_v51  ;;  %v1551_v44 = vmul.f32 3.8918573e-05, %v1539_v51  ;;  %v3739_v54 = vadd.f32 %v3717_v1, %v1468_v17  ;;  %v2039_v17 = vmul.f32 %v2038_v29, %v2019_v58 }
 0x249   : > { %v1541_v38 = vadd.f32 0.00028619796, %v1540_v5  ;;  %v1552_v39 = vadd.f32 0.001143296, %v1551_v44  ;;  %v3742_v50 = vmul.f32 0.70710677, %v3739_v54 }
 0x24a   : > { %v3774_v61 = vadd.f32 1.0, %v2039_v17 }
 0x24b   : > { %v1542_v60 = vmul.f32 %v1541_v38, %v1539_v51  ;;  %v1553_v48 = vmul.f32 %v1552_v39, %v1539_v51  ;;  %v1578_v25 = vmul.f32 %v3742_v50, %v3742_v50 }
 0x24c   : > { %vm2046_vm1 = vweird.f32 %v3774_v61  ;;  %v2052_v32 = vand.u32 2147483648, %v3774_v61 }
 0x24d   : > { %v1543_v45 = vadd.f32 0.0036580483, %v1542_v60  ;;  %v1554_v23 = vadd.f32 0.014752088, %v1553_v48  ;;  %v3751_v47 = vmin.f32 %v1578_v25, 16.0  ;;  %v3783_v25 = vmul.f32 0.5, %v3723_v8 }
 0x24e   : > { %v1471_v28 = vpop.f32.mrf.mxu2  ;;  %v2053_v17 = vor.u32 1.1754944e-38, %v2052_v32 }
 0x24f   : > { %v1544_v27 = vmul.f32 %v1543_v45, %v1539_v51  ;;  %v1555_v42 = vmul.f32 %v1554_v23, %v1539_v51  ;;  %v3754_v19 = vadd.f32 %v3717_v1, %v1471_v28  ;;  %v1580_v24 = vmul.f32 2.1237322e-06, %v3751_v47 }
 0x250   : > { %v1591_v49 = vmul.f32 3.8918573e-05, %v3751_v47 }
 0x251   : > { %v1545_v56 = vadd.f32 0.05243302, %v1544_v27  ;;  %v1556_v34 = vadd.f32 0.112945676, %v1555_v42  ;;  %v1581_v7 = vadd.f32 0.00028619796, %v1580_v24 }
 0x252   : > { %v1592_v26 = vadd.f32 0.001143296, %v1591_v49  ;;  %v3761_v18 = vmul.f32 0.70710677, %v3754_v19  ;;  %v2050_v24 = vand.u32 2147483647, %v3774_v61 }
 0x253   : > { %v1546_v46 = vmul.f32 %v1545_v56, %v1539_v51  ;;  %v1557_v15 = vmul.f32 %v1556_v34, %v1539_v51  ;;  %v1582_v33 = vmul.f32 %v1581_v7, %v3751_v47 }
 0x254   : > { %v1593_v2 = vmul.f32 %v1592_v26, %v3751_v47  ;;  %v1618_v3 = vmul.f32 %v3761_v18, %v3761_v18  ;;  %vm3816_vm3 = vcmp.eq.f32.partialorder %v2050_v24, 8.507059e+37 }
 0x255   : > { %v1547_v11 = vadd.f32 0.18741608, %v1546_v46  ;;  %v1558_v41 = vadd.f32 0.4994258, %v1557_v15  ;;  %v1583_v14 = vadd.f32 0.0036580483, %v1582_v33 }
 0x256   : > { %v1594_v37 = vadd.f32 0.014752088, %v1593_v2  ;;  %v3768_v0 = vmin.f32 %v1618_v3, 16.0  ;;  %v1473_v43 = vpop.f32.mrf.mxu2  ;;  %v2063_v46 = vadd.f32 0.0036580483, %v2062_v10 }
 0x257   : > { %v1548_v62 = vmul.f32 %v1547_v11, %v1539_v51  ;;  %v1559_v35 = vmul.f32 %v1558_v41, %v1539_v51  ;;  %v1584_v21 = vmul.f32 %v1583_v14, %v3751_v47  ;;  %v3799_v49 = vadd.f32 %v3717_v1, %v1473_v43 }
 0x258   : > { %v1595_v5 = vmul.f32 %v1594_v37, %v3751_v47  ;;  %v1620_v51 = vmul.f32 2.1237322e-06, %v3768_v0  ;;  %v1631_v58 = vmul.f32 3.8918573e-05, %v3768_v0  ;;  %v2064_v12 = vmul.f32 %v2063_v46, %v3756_v36 }
 0x259   : > { %v3772_v44 = vadd.f32 1.0, %v1559_v35  ;;  %v1585_v38 = vadd.f32 0.05243302, %v1584_v21  ;;  %v1549_v20 = vadd.f32 1.1283791, %v1548_v62 }
 0x25a   : > { %v1596_v39 = vadd.f32 0.112945676, %v1595_v5  ;;  %v1621_v42 = vadd.f32 0.00028619796, %v1620_v51  ;;  %v1632_v8 = vadd.f32 0.001143296, %v1631_v58 }
 0x25b   : > { %2868 = vrcp.f32 %v3772_v44  ;;  %v1586_v60 = vmul.f32 %v1585_v38, %v3751_v47  ;;  %v1570_v45 = vand.u32 2147483647, %v3772_v44  ;;  %v1550_v28 = vmul.f32 %v1549_v20, %v3729_v40 }
 0x25c   : > { %v1597_v48 = vmul.f32 %v1596_v39, %v3751_v47  ;;  %2870 = vrcp.f32 %v3774_v61  ;;  %v1572_v27 = vand.u32 2147483648, %v3772_v44  ;;  %vm1566_vm0 = vweird.f32 %v3772_v44 }
 0x25d   : > { %v1587_v23 = vadd.f32 0.18741608, %v1586_v60  ;;  %v1622_v40 = vmul.f32 %v1621_v42, %v3768_v0  ;;  %v1633_v34 = vmul.f32 %v1632_v8, %v3768_v0  ;;  %vm3807_vm2 = vcmp.eq.f32.partialorder %v1570_v45, 8.507059e+37  ;;  %v1501_v46 = vpop.f32.mrf.mxu3 }
 0x25e   : > { %v1598_v16 = vadd.f32 0.4994258, %v1597_v48  ;;  %v1573_v15 = vor.u32 1.1754944e-38, %v1572_v27  ;;  %v3821_v11 = vmul.f32 0.70710677, %v3799_v49 }
 0x25f   : > { %v1588_v56 = vmul.f32 %v1587_v23, %v3751_v47  ;;  %v1623_v33 = vadd.f32 0.0036580483, %v1622_v40  ;;  %v1634_v2 = vadd.f32 0.014752088, %v1633_v34  ;;  %v2065_v38 = vadd.f32 0.05243302, %v2064_v12 }
 0x260   : > { %v1599_v55 = vmul.f32 %v1598_v16, %v3751_v47  ;;  %v2071_v47 = vmul.f32 3.8918573e-05, %v3756_v36  ;;  %v1658_v45 = vmul.f32 %v3821_v11, %v3821_v11 }
 0x261   : > { %v2869_v22 = vpop.eup %2868  ;;  %v1589_v41 = vadd.f32 1.1283791, %v1588_v56  ;;  %v1624_v3 = vmul.f32 %v1623_v33, %v3768_v0  ;;  %v1635_v37 = vmul.f32 %v1634_v2, %v3768_v0  ;;  %v2066_v16 = vmul.f32 %v2065_v38, %v3756_v36 }
 0x262   : > { %v2871_v57 = vpop.eup %2870  ;;  %v1562_v7 = vmul.f32 %v2869_v22, %v3772_v44  ;;  %v3811_v31 = vadd.f32 1.0, %v1599_v55  ;;  %vm1567_vm4 = vweird.f32 %v2869_v22  ;;  %v2072_v62 = vadd.f32 0.001143296, %v2071_v47 }
 0x263   : > { %v2042_v9 = vmul.f32 %v2871_v57, %v3774_v61  ;;  %vm2047_vm5 = vweird.f32 %v2871_v57  ;;  %v1625_v21 = vadd.f32 0.05243302, %v1624_v3  ;;  %v1636_v59 = vadd.f32 0.112945676, %v1635_v37  ;;  %vm1568_vm6 = vmor %vm1566_vm0, %vm1567_vm4 }
 0x264   : > { %v1563_v53 = vsub.f32 1.0, %v1562_v7  ;;  %2872 = vrcp.f32 %v3811_v31  ;;  %v2073_v39 = vmul.f32 %v2072_v62, %v3756_v36  ;;  %v1590_v6 = vmul.f32 %v1589_v41, %v3742_v50  ;;  %vm2048_vm7 = vmor %vm2046_vm1, %vm2047_vm5 }
 0x265   : > { %v2043_v29 = vsub.f32 1.0, %v2042_v9  ;;  %v1610_v20 = vand.u32 2147483647, %v3811_v31  ;;  %v1626_v58 = vmul.f32 %v1625_v21, %v3768_v0  ;;  %v1637_v10 = vmul.f32 %v1636_v59, %v3768_v0 }
 0x266   : > { %v1564_v14 = vmul.f32 %v2869_v22, %v1563_v53  ;;  %v2074_v43 = vadd.f32 0.014752088, %v2073_v39  ;;  %v1612_v24 = vand.u32 2147483648, %v3811_v31  ;;  %v3848_v34 = vmin.f32 %v1658_v45, 16.0 }
 0x267   : > { %v2044_v35 = vmul.f32 %v2871_v57, %v2043_v29  ;;  %v1627_v61 = vadd.f32 0.18741608, %v1626_v58  ;;  %v1638_v8 = vadd.f32 0.4994258, %v1637_v10  ;;  %v2067_v7 = vadd.f32 0.18741608, %v2066_v16 }
 0x268   : > { %v1565_v5 = vadd.f32 %v2869_v22, %v1564_v14  ;;  %v2075_v56 = vmul.f32 %v2074_v43, %v3756_v36  ;;  %vm1606_vm9 = vweird.f32 %v3811_v31  ;;  %vm1611_vm10 = vcmp.eq.f32.partialorder %v1610_v20, 8.507059e+37 }
 0x269   : > { %v2045_v51 = vadd.f32 %v2871_v57, %v2044_v35  ;;  %v1639_v40 = vmul.f32 %v1638_v8, %v3768_v0  ;;  %v1613_v4 = vor.u32 1.1754944e-38, %v1612_v24  ;;  %v1660_v41 = vmul.f32 2.1237322e-06, %v3848_v34 }
 0x26a   : > { %v2873_v60 = vpop.eup %2872  ;;  %v1569_v48 = vsel %vm1568_vm6, %v2869_v22, %v1565_v5  ;;  %v2076_v26 = vadd.f32 0.112945676, %v2075_v56  ;;  %v2068_v29 = vmul.f32 %v2067_v7, %v3756_v36  ;;  %v3866_v3 = vadd.f32 %v3717_v1, %v1501_v46 }
 0x26b   : > { %v1574_v44 = vsel %vm3807_vm2, %v1573_v15, %v1569_v48  ;;  %v1602_v50 = vmul.f32 %v2873_v60, %v3811_v31  ;;  %v2049_v23 = vsel %vm2048_vm7, %v2871_v57, %v2045_v51  ;;  %vm1607_vm8 = vweird.f32 %v2873_v60 }
 0x26c   : > { %v1575_v27 = vmul.f32 %v1574_v44, %v1550_v28  ;;  %v2054_v42 = vsel %vm3816_vm3, %v2053_v17, %v2049_v23  ;;  %v1628_v15 = vmul.f32 %v1627_v61, %v3768_v0  ;;  %v3852_v9 = vadd.f32 1.0, %v1639_v40  ;;  %vm1608_vm11 = vmor %vm1606_vm9, %vm1607_vm8  ;;  %v1503_v44 = vpop.f32.mrf.mxu3 }
 0x26d   : > { %v1603_v55 = vsub.f32 1.0, %v1602_v50  ;;  %v2055_v22 = vmul.f32 %v2054_v42, %v3791_v13  ;;  %v2077_v2 = vmul.f32 %v2076_v26, %v3756_v36  ;;  %v1507_v62 = vmul.f32 0.5, %v3739_v54 }
 0x26e   : > { %v2638_v32 = vclamps-f32 %v1575_v27, 1.0  ;;  %2874 = vrcp.f32 %v3852_v9  ;;  %v1629_v37 = vadd.f32 1.1283791, %v1628_v15  ;;  %v1652_v21 = vand.u32 2147483648, %v3852_v9 }
 0x26f   : > { %v1604_v57 = vmul.f32 %v2873_v60, %v1603_v55  ;;  %v2650_v28 = vclamps-f32 %v2055_v22, 1.0  ;;  %v2078_v12 = vadd.f32 0.4994258, %v2077_v2  ;;  %v1661_v59 = vadd.f32 0.00028619796, %v1660_v41 }
 0x270   : > { %v2178_v47 = vadd.f32 1.0, %v2638_v32  ;;  %v1671_v38 = vmul.f32 3.8918573e-05, %v3848_v34  ;;  %v3878_v20 = vmul.f32 0.5, %v3754_v19  ;;  %v2069_v51 = vadd.f32 1.1283791, %v2068_v29 }
 0x271   : > { %v1605_v13 = vadd.f32 %v2873_v60, %v1604_v57  ;;  %v2190_v33 = vadd.f32 1.0, %v2650_v28  ;;  %v2079_v5 = vmul.f32 %v2078_v12, %v3756_v36  ;;  %v3881_v54 = vmul.f32 0.70710677, %v3866_v3 }
 0x272   : > { %v3856_v53 = vmul.f32 %v2178_v47, %v3783_v25  ;;  %v1662_v10 = vmul.f32 %v1661_v59, %v3848_v34  ;;  %v1672_v36 = vadd.f32 0.001143296, %v1671_v38  ;;  %vm1646_vm12 = vweird.f32 %v3852_v9 }
 0x273   : > { %v1609_v31 = vsel %vm1608_vm11, %v2873_v60, %v1605_v13  ;;  %v3862_v0 = vmul.f32 %v2190_v33, %v3786_v52  ;;  %v1650_v52 = vand.u32 2147483647, %v3852_v9  ;;  %v1630_v60 = vmul.f32 %v1629_v37, %v3761_v18 }
 0x274   : > { %v2210_v25 = vpack.c.bf16 %v3856_v53, %v3856_v53  ;;  %v1614_v14 = vsel %vm1611_vm10, %v1613_v4, %v1609_v31  ;;  %v2875_v58 = vpop.eup %2874  ;;  %v3884_v48 = vadd.f32 1.0, %v2079_v5  ;;  %v2098_v19 = vmul.f32 %v3881_v54, %v3881_v54 }
 0x275   : > { %v1615_v35 = vmul.f32 %v1614_v14, %v1590_v6  ;;  %v2222_v17 = vpack.c.bf16 %v3862_v0, %v3862_v0  ;;  %v1476_v6 = vpop.f32.mrf.mxu2  ;;  %v1642_v45 = vmul.f32 %v2875_v58, %v3852_v9  ;;  %vm3891_vm13 = vcmp.eq.f32.partialorder %v1650_v52, 8.507059e+37 }
 0x276   : > { %v1653_v23 = vor.u32 1.1754944e-38, %v1652_v21  ;;  %2876 = vrcp.f32 %v3884_v48  ;;  %v3897_v18 = vadd.f32 %v3717_v1, %v1476_v6  ;;  %v1663_v42 = vadd.f32 0.0036580483, %v1662_v10 }
 0x277   : > { %v2639_v39 = vclamps-f32 %v1615_v35, 1.0  ;;  %v1643_v27 = vsub.f32 1.0, %v1642_v45  ;;  %v1673_v61 = vmul.f32 %v1672_v36, %v3848_v34  ;;  %vm1647_vm14 = vweird.f32 %v2875_v58 }
 0x278   : > { %v2090_v8 = vand.u32 2147483647, %v3884_v48  ;;  %v3903_v55 = vmin.f32 %v2098_v19, 16.0  ;;  %v3906_v24 = vadd.f32 %v3717_v1, %v1503_v44  ;;  %v1664_v40 = vmul.f32 %v1663_v42, %v3848_v34  ;;  %vm1648_vm0 = vmor %vm1646_vm12, %vm1647_vm14 }
 0x279   : > { %v2179_v43 = vadd.f32 1.0, %v2639_v39  ;;  %v1644_v32 = vmul.f32 %v2875_v58, %v1643_v27  ;;  %v2070_v57 = vmul.f32 %v2069_v51, %v3745_v30  ;;  %v1674_v28 = vadd.f32 0.014752088, %v1673_v61 }
 0x27a   : > { %v2100_v7 = vmul.f32 2.1237322e-06, %v3903_v55  ;;  %v2111_v26 = vmul.f32 3.8918573e-05, %v3903_v55  ;;  %vm2086_vm15 = vweird.f32 %v3884_v48  ;;  %v1665_v47 = vadd.f32 0.05243302, %v1664_v40 }
 0x27b   : > { %v3899_v16 = vmul.f32 %v2179_v43, %v1507_v62  ;;  %v1645_v46 = vadd.f32 %v2875_v58, %v1644_v32  ;;  %v3918_v15 = vmul.f32 0.70710677, %v3897_v18  ;;  %v2092_v30 = vand.u32 2147483648, %v3884_v48 }
 0x27c   : > { %v2877_v13 = vpop.eup %2876  ;;  %v1675_v33 = vmul.f32 %v1674_v28, %v3848_v34  ;;  %v2101_v2 = vadd.f32 0.00028619796, %v2100_v7  ;;  %v2112_v4 = vadd.f32 0.001143296, %v2111_v26  ;;  %vm3926_vm1 = vcmp.eq.f32.partialorder %v2090_v8, 8.507059e+37 }
 0x27d   : > { %v2211_v22 = vpack.c.bf16 %v3899_v16, %v3899_v16  ;;  %v2734_v56 = vpack.c.bf16 %v3899_v16, %v3856_v53  ;;  %v1649_v41 = vsel %vm1648_vm0, %v2875_v58, %v1645_v46  ;;  %v2082_v31 = vmul.f32 %v2877_v13, %v3884_v48 }
 0x27e   : > { %v3931_v14 = vmul.f32 0.70710677, %v3906_v24  ;;  %v1654_v9 = vsel %vm3891_vm13, %v1653_v23, %v1649_v41  ;;  %v1676_v37 = vadd.f32 0.112945676, %v1675_v33  ;;  %v2102_v12 = vmul.f32 %v2101_v2, %v3903_v55 }
 0x27f   : > { %2735 = vst [vmem:[#allocation2] sm:$0xff] %v2734_v56   ;;  %v2113_v62 = vmul.f32 %v2112_v4, %v3903_v55  ;;  %v1655_v35 = vmul.f32 %v1654_v9, %v1630_v60  ;;  %v2083_v52 = vsub.f32 1.0, %v2082_v31  ;;  %v1666_v21 = vmul.f32 %v1665_v47, %v3848_v34 }
 0x280   : > { %v1698_v5 = vmul.f32 %v3918_v15, %v3918_v15  ;;  %vm2087_vm2 = vweird.f32 %v2877_v13  ;;  %v1677_v59 = vmul.f32 %v1676_v37, %v3848_v34  ;;  %v2103_v38 = vadd.f32 0.0036580483, %v2102_v12 }
 0x281   : > { %v2114_v39 = vadd.f32 0.014752088, %v2113_v62  ;;  %v2640_v51 = vclamps-f32 %v1655_v35, 1.0  ;;  %v2084_v6 = vmul.f32 %v2877_v13, %v2083_v52  ;;  %v2138_v10 = vmul.f32 %v3931_v14, %v3931_v14  ;;  %vm2088_vm3 = vmor %vm2086_vm15, %vm2087_vm2 }
 0x282   : > { %v3941_v58 = vmin.f32 %v1698_v5, 16.0  ;;  %v2093_v36 = vor.u32 1.1754944e-38, %v2092_v30  ;;  %v1678_v60 = vadd.f32 0.4994258, %v1677_v59  ;;  %v2104_v43 = vmul.f32 %v2103_v38, %v3903_v55 }
 0x283   : > { %v2115_v45 = vmul.f32 %v2114_v39, %v3903_v55  ;;  %v2180_v19 = vadd.f32 1.0, %v2640_v51  ;;  %v2085_v44 = vadd.f32 %v2877_v13, %v2084_v6  ;;  %v1667_v50 = vadd.f32 0.18741608, %v1666_v21 }
 0x284   : > { %v1700_v23 = vmul.f32 2.1237322e-06, %v3941_v58  ;;  %v1679_v27 = vmul.f32 %v1678_v60, %v3848_v34  ;;  %v2105_v42 = vadd.f32 0.05243302, %v2104_v43  ;;  %v1711_v8 = vmul.f32 3.8918573e-05, %v3941_v58 }
 0x285   : > { %v2116_v61 = vadd.f32 0.112945676, %v2115_v45  ;;  %v3954_v56 = vmul.f32 %v2180_v19, %v3878_v20  ;;  %v2089_v32 = vsel %vm2088_vm3, %v2877_v13, %v2085_v44  ;;  %v3956_v28 = vmin.f32 %v2138_v10, 16.0  ;;  %v1478_v13 = vpop.f32.mrf.mxu2 }
 0x286   : > { %v1701_v40 = vadd.f32 0.00028619796, %v1700_v23  ;;  %v2094_v7 = vsel %vm3926_vm1, %v2093_v36, %v2089_v32  ;;  %v3960_v26 = vadd.f32 1.0, %v1679_v27  ;;  %v2106_v48 = vmul.f32 %v2105_v42, %v3903_v55 }
 0x287   : > { %v2117_v46 = vmul.f32 %v2116_v61, %v3903_v55  ;;  %v2212_v47 = vpack.c.bf16 %v3954_v56, %v3954_v56  ;;  %v2095_v30 = vmul.f32 %v2094_v7, %v2070_v57  ;;  %v1712_v33 = vadd.f32 0.001143296, %v1711_v8 }
 0x288   : > { %v1702_v20 = vmul.f32 %v1701_v40, %v3941_v58  ;;  %v1668_v2 = vmul.f32 %v1667_v50, %v3848_v34  ;;  %2878 = vrcp.f32 %v3960_v26  ;;  %v1519_v29 = vmul.f32 0.5, %v3736_v63 }
 0x289   : > { %v2651_v4 = vclamps-f32 %v2095_v30, 1.0  ;;  %v2118_v41 = vadd.f32 0.4994258, %v2117_v46  ;;  %v1713_v31 = vmul.f32 %v1712_v33, %v3941_v58  ;;  %v2140_v37 = vmul.f32 2.1237322e-06, %v3956_v28 }
 0x28a   : > { %v1703_v9 = vadd.f32 0.0036580483, %v1702_v20  ;;  %v3973_v12 = vadd.f32 %v3717_v1, %v1478_v13  ;;  %v2107_v62 = vadd.f32 0.18741608, %v2106_v48  ;;  %v1669_v34 = vadd.f32 1.1283791, %v1668_v2 }
 0x28b   : > { %v2191_v57 = vadd.f32 1.0, %v2651_v4  ;;  %v2119_v35 = vmul.f32 %v2118_v41, %v3903_v55  ;;  %v1714_v52 = vadd.f32 0.014752088, %v1713_v31  ;;  %v2141_v5 = vadd.f32 0.00028619796, %v2140_v37 }
 0x28c   : > { %v1704_v21 = vmul.f32 %v1703_v9, %v3941_v58  ;;  %v2151_v59 = vmul.f32 3.8918573e-05, %v3956_v28  ;;  %v3981_v63 = vmul.f32 0.5, %v3799_v49  ;;  %v3988_v43 = vmul.f32 0.70710677, %v3973_v12 }
 0x28d   : > { %v3978_v38 = vmul.f32 %v2191_v57, %v1519_v29  ;;  %v3983_v39 = vadd.f32 1.0, %v2119_v35  ;;  %v1715_v51 = vmul.f32 %v1714_v52, %v3941_v58  ;;  %v2142_v36 = vmul.f32 %v2141_v5, %v3956_v28  ;;  %v1481_v40 = vpop.f32.mrf.mxu2 }
 0x28e   : > { %v2879_v6 = vpop.eup %2878  ;;  %v1705_v10 = vadd.f32 0.05243302, %v1704_v21  ;;  %v2152_v60 = vadd.f32 0.001143296, %v2151_v59  ;;  %v2108_v44 = vmul.f32 %v2107_v62, %v3903_v55  ;;  %v1670_v50 = vmul.f32 %v1669_v34, %v3821_v11 }
 0x28f   : > { %v2223_v45 = vpack.c.bf16 %v3978_v38, %v3978_v38  ;;  %v2764_v19 = vpack.c.bf16 %v3978_v38, %v3862_v0  ;;  %v1682_v49 = vmul.f32 %v2879_v6, %v3960_v26  ;;  %v1690_v23 = vand.u32 2147483647, %v3960_v26 }
 0x290   : > { %v3999_v27 = vmul.f32 0.5, %v3866_v3  ;;  %2880 = vrcp.f32 %v3983_v39  ;;  %v1692_v61 = vand.u32 2147483648, %v3960_v26  ;;  %v1706_v8 = vmul.f32 %v1705_v10, %v3941_v58 }
 0x291   : > { %2776 = vst [vmem:[#allocation2 + $0x30] sm:$0xff] %v2764_v19   ;;  %v1683_v42 = vsub.f32 1.0, %v1682_v49  ;;  %v1716_v32 = vadd.f32 0.112945676, %v1715_v51  ;;  %vm1686_vm4 = vweird.f32 %v3960_v26  ;;  %v2143_v55 = vadd.f32 0.0036580483, %v2142_v36 }
 0x292   : > { %v2153_v11 = vmul.f32 %v2152_v60, %v3956_v28  ;;  %v1738_v7 = vmul.f32 %v3988_v43, %v3988_v43  ;;  %vm1687_vm5 = vweird.f32 %v2879_v6  ;;  %v2109_v48 = vadd.f32 1.1283791, %v2108_v44 }
 0x293   : > { %v1684_v3 = vmul.f32 %v2879_v6, %v1683_v42  ;;  %v1717_v46 = vmul.f32 %v1716_v32, %v3941_v58  ;;  %vm4009_vm6 = vcmp.eq.f32.partialorder %v1690_v23, 8.507059e+37  ;;  %v2144_v20 = vmul.f32 %v2143_v55, %v3956_v28  ;;  %vm1688_vm7 = vmor %vm1686_vm4, %vm1687_vm5 }
 0x294   : > { %v2154_v33 = vadd.f32 0.014752088, %v2153_v11  ;;  %v4014_v13 = vmin.f32 %v1738_v7, 16.0  ;;  %v1693_v4 = vor.u32 1.1754944e-38, %v1692_v61  ;;  %v1707_v41 = vadd.f32 0.18741608, %v1706_v8 }
 0x295   : > { %v1685_v2 = vadd.f32 %v2879_v6, %v1684_v3  ;;  %v1718_v31 = vadd.f32 0.4994258, %v1717_v46  ;;  %v2145_v9 = vadd.f32 0.05243302, %v2144_v20  ;;  %v2110_v52 = vmul.f32 %v2109_v48, %v3881_v54  ;;  %v1483_v8 = vpop.f32.mrf.mxu2 }
 0x296   : > { %v2881_v29 = vpop.eup %2880  ;;  %v2155_v37 = vmul.f32 %v2154_v33, %v3956_v28  ;;  %v1740_v57 = vmul.f32 2.1237322e-06, %v4014_v13  ;;  %v1751_v62 = vmul.f32 3.8918573e-05, %v4014_v13  ;;  %v2130_v21 = vand.u32 2147483647, %v3983_v39 }
 0x297   : > { %v1689_v35 = vsel %vm1688_vm7, %v2879_v6, %v1685_v2  ;;  %v2122_v34 = vmul.f32 %v2881_v29, %v3983_v39  ;;  %v2132_v26 = vand.u32 2147483648, %v3983_v39  ;;  %v1719_v59 = vmul.f32 %v1718_v31, %v3941_v58 }
 0x298   : > { %v1694_v5 = vsel %vm4009_vm6, %v1693_v4, %v1689_v35  ;;  %v2156_v51 = vadd.f32 0.112945676, %v2155_v37  ;;  %v1708_v60 = vmul.f32 %v1707_v41, %v3941_v58  ;;  %v1741_v19 = vadd.f32 0.00028619796, %v1740_v57 }
 0x299   : > { %v1695_v10 = vmul.f32 %v1694_v5, %v1670_v50  ;;  %v2123_v36 = vsub.f32 1.0, %v2122_v34  ;;  %v4029_v6 = vadd.f32 1.0, %v1719_v59  ;;  %v2146_v54 = vmul.f32 %v2145_v9, %v3956_v28 }
 0x29a   : > { %v2157_v49 = vmul.f32 %v2156_v51, %v3956_v28  ;;  %v1752_v44 = vadd.f32 0.001143296, %v1751_v62  ;;  %vm2127_vm8 = vweird.f32 %v2881_v29  ;;  %v1742_v61 = vmul.f32 %v1741_v19, %v4014_v13 }
 0x29b   : > { %v2641_v23 = vclamps-f32 %v1695_v10, 1.0  ;;  %v2124_v42 = vmul.f32 %v2881_v29, %v2123_v36  ;;  %vm2126_vm9 = vweird.f32 %v3983_v39  ;;  %vm4035_vm10 = vcmp.eq.f32.partialorder %v2130_v21, 8.507059e+37 }
 0x29c   : > { %2882 = vrcp.f32 %v4029_v6  ;;  %v4041_v58 = vadd.f32 %v3717_v1, %v1481_v40  ;;  %v2133_v11 = vor.u32 1.1754944e-38, %v2132_v26  ;;  %v2158_v7 = vadd.f32 0.4994258, %v2157_v49  ;;  %vm2128_vm11 = vmor %vm2126_vm9, %vm2127_vm8 }
 0x29d   : > { %v2181_v32 = vadd.f32 1.0, %v2641_v23  ;;  %v2125_v55 = vadd.f32 %v2881_v29, %v2124_v42  ;;  %v2147_v3 = vadd.f32 0.18741608, %v2146_v54  ;;  %v1743_v48 = vadd.f32 0.0036580483, %v1742_v61 }
 0x29e   : > { %v1753_v46 = vmul.f32 %v1752_v44, %v4014_v13  ;;  %v4045_v39 = vadd.f32 %v3717_v1, %v1483_v8  ;;  %v1709_v33 = vadd.f32 1.1283791, %v1708_v60  ;;  %v2159_v40 = vmul.f32 %v2158_v7, %v3956_v28  ;;  %v1486_v7 = vpop.f32.mrf.mxu2 }
 0x29f   : > { %v4048_v30 = vmul.f32 %v2181_v32, %v3981_v63  ;;  %v2129_v20 = vsel %vm2128_vm11, %v2881_v29, %v2125_v55  ;;  %v1730_v4 = vand.u32 2147483647, %v4029_v6  ;;  %v4055_v31 = vmul.f32 0.70710677, %v4041_v58 }
 0x2a0   : > { %v2134_v2 = vsel %vm4035_vm10, %v2133_v11, %v2129_v20  ;;  %v1754_v41 = vadd.f32 0.014752088, %v1753_v46  ;;  %v1744_v29 = vmul.f32 %v1743_v48, %v4014_v13  ;;  %v2148_v62 = vmul.f32 %v2147_v3, %v3956_v28 }
 0x2a1   : > { %v2213_v9 = vpack.c.bf16 %v4048_v30, %v4048_v30  ;;  %v2739_v63 = vpack.c.bf16 %v4048_v30, %v3954_v56  ;;  %v2135_v37 = vmul.f32 %v2134_v2, %v2110_v52  ;;  %v4063_v35 = vadd.f32 1.0, %v2159_v40 }
 0x2a2   : > { %v2883_v57 = vpop.eup %2882  ;;  %v1755_v34 = vmul.f32 %v1754_v41, %v4014_v13  ;;  %v1778_v21 = vmul.f32 %v4055_v31, %v4055_v31  ;;  %v4069_v26 = vmul.f32 0.5, %v3897_v18  ;;  %v4073_v52 = vmul.f32 0.5, %v3906_v24 }
 0x2a3   : > { %2771 = vst [vmem:[#allocation2 + $0x8] sm:$0xff] %v2739_v63   ;;  %v2652_v5 = vclamps-f32 %v2135_v37, 1.0  ;;  %v1722_v59 = vmul.f32 %v2883_v57, %v4029_v6  ;;  %v1710_v51 = vmul.f32 %v1709_v33, %v3918_v15  ;;  %vm1726_vm12 = vweird.f32 %v4029_v6 }
 0x2a4   : > { %v1732_v28 = vand.u32 2147483648, %v4029_v6  ;;  %2884 = vrcp.f32 %v4063_v35  ;;  %v1745_v60 = vadd.f32 0.05243302, %v1744_v29  ;;  %v1756_v19 = vadd.f32 0.112945676, %v1755_v34 }
 0x2a5   : > { %v2192_v10 = vadd.f32 1.0, %v2652_v5  ;;  %v1723_v36 = vsub.f32 1.0, %v1722_v59  ;;  %vm4079_vm13 = vcmp.eq.f32.partialorder %v1730_v4, 8.507059e+37  ;;  %v2149_v54 = vadd.f32 1.1283791, %v2148_v62 }
 0x2a6   : > { %v4083_v49 = vmin.f32 %v1778_v21, 16.0  ;;  %v4086_v24 = vmul.f32 0.70710677, %v4045_v39  ;;  %vm1727_vm14 = vweird.f32 %v2883_v57  ;;  %v1757_v23 = vmul.f32 %v1756_v19, %v4014_v13 }
 0x2a7   : > { %v4089_v15 = vmul.f32 %v2192_v10, %v3999_v27  ;;  %v1724_v44 = vmul.f32 %v2883_v57, %v1723_v36  ;;  %v1733_v42 = vor.u32 1.1754944e-38, %v1732_v28  ;;  %v1746_v11 = vmul.f32 %v1745_v60, %v4014_v13  ;;  %vm1728_vm15 = vmor %vm1726_vm12, %vm1727_vm14 }
 0x2a8   : > { %v1780_v61 = vmul.f32 2.1237322e-06, %v4083_v49  ;;  %v1791_v8 = vmul.f32 3.8918573e-05, %v4083_v49  ;;  %v1818_v50 = vmul.f32 %v4086_v24, %v4086_v24  ;;  %v1758_v27 = vadd.f32 0.4994258, %v1757_v23 }
 0x2a9   : > { %v2224_v32 = vpack.c.bf16 %v4089_v15, %v4089_v15  ;;  %v1725_v55 = vadd.f32 %v2883_v57, %v1724_v44  ;;  %v2150_v48 = vmul.f32 %v2149_v54, %v3931_v14  ;;  %v2170_v4 = vand.u32 2147483647, %v4063_v35 }
 0x2aa   : > { %v2885_v3 = vpop.eup %2884  ;;  %v1781_v46 = vadd.f32 0.00028619796, %v1780_v61  ;;  %v1792_v20 = vadd.f32 0.001143296, %v1791_v8  ;;  %v4102_v33 = vmin.f32 %v1818_v50, 16.0  ;;  %v2172_v41 = vand.u32 2147483648, %v4063_v35 }
 0x2ab   : > { %v1729_v40 = vsel %vm1728_vm15, %v2883_v57, %v1725_v55  ;;  %v2162_v2 = vmul.f32 %v2885_v3, %v4063_v35  ;;  %v1759_v37 = vmul.f32 %v1758_v27, %v4014_v13  ;;  %v1747_v34 = vadd.f32 0.18741608, %v1746_v11 }
 0x2ac   : > { %v1734_v63 = vsel %vm4079_vm13, %v1733_v42, %v1729_v40  ;;  %v1782_v6 = vmul.f32 %v1781_v46, %v4083_v49  ;;  %v1793_v14 = vmul.f32 %v1792_v20, %v4083_v49  ;;  %v1820_v57 = vmul.f32 2.1237322e-06, %v4102_v33 }
 0x2ad   : > { %v1735_v29 = vmul.f32 %v1734_v63, %v1710_v51  ;;  %v2163_v62 = vsub.f32 1.0, %v2162_v2  ;;  %vm2167_vm0 = vweird.f32 %v2885_v3  ;;  %v4113_v21 = vadd.f32 1.0, %v1759_v37 }
 0x2ae   : > { %v1783_v5 = vadd.f32 0.0036580483, %v1782_v6  ;;  %v1794_v59 = vadd.f32 0.014752088, %v1793_v14  ;;  %v1821_v36 = vadd.f32 0.00028619796, %v1820_v57  ;;  %vm2166_vm1 = vweird.f32 %v4063_v35 }
 0x2af   : > { %v2642_v28 = vclamps-f32 %v1735_v29, 1.0  ;;  %v2164_v10 = vmul.f32 %v2885_v3, %v2163_v62  ;;  %v1831_v60 = vmul.f32 3.8918573e-05, %v4102_v33  ;;  %vm4117_vm2 = vcmp.eq.f32.partialorder %v2170_v4, 8.507059e+37  ;;  %vm2168_vm3 = vmor %vm2166_vm1, %vm2167_vm0 }
 0x2b0   : > { %2886 = vrcp.f32 %v4113_v21  ;;  %v4123_v51 = vadd.f32 %v3717_v1, %v1486_v7  ;;  %v1784_v44 = vmul.f32 %v1783_v5, %v4083_v49  ;;  %v1795_v23 = vmul.f32 %v1794_v59, %v4083_v49  ;;  %v1488_v7 = vpop.f32.mrf.mxu2 }
 0x2b1   : > { %v2182_v18 = vadd.f32 1.0, %v2642_v28  ;;  %v2165_v54 = vadd.f32 %v2885_v3, %v2164_v10  ;;  %v2173_v42 = vor.u32 1.1754944e-38, %v2172_v41  ;;  %v1748_v35 = vmul.f32 %v1747_v34, %v4014_v13 }
 0x2b2   : > { %v1822_v61 = vmul.f32 %v1821_v36, %v4102_v33  ;;  %v1832_v8 = vadd.f32 0.001143296, %v1831_v60  ;;  %v1785_v11 = vadd.f32 0.05243302, %v1784_v44  ;;  %v1796_v27 = vadd.f32 0.112945676, %v1795_v23 }
 0x2b3   : > { %v4131_v50 = vmul.f32 %v2182_v18, %v4069_v26  ;;  %v2169_v55 = vsel %vm2168_vm3, %v2885_v3, %v2165_v54  ;;  %v4137_v2 = vmul.f32 0.70710677, %v4123_v51  ;;  %v1749_v63 = vadd.f32 1.1283791, %v1748_v35 }
 0x2b4   : > { %v2174_v46 = vsel %vm4117_vm2, %v2173_v42, %v2169_v55  ;;  %v1823_v20 = vadd.f32 0.0036580483, %v1822_v61  ;;  %v1833_v40 = vmul.f32 %v1832_v8, %v4102_v33  ;;  %v1786_v26 = vmul.f32 %v1785_v11, %v4083_v49 }
 0x2b5   : > { %v2214_v13 = vpack.c.bf16 %v4131_v50, %v4131_v50  ;;  %v2175_v4 = vmul.f32 %v2174_v46, %v2150_v48  ;;  %v1797_v3 = vmul.f32 %v1796_v27, %v4083_v49  ;;  %v1858_v14 = vmul.f32 %v4137_v2, %v4137_v2 }
 0x2b6   : > { %v2887_v41 = vpop.eup %2886  ;;  %v1824_v37 = vmul.f32 %v1823_v20, %v4102_v33  ;;  %v1834_v6 = vadd.f32 0.014752088, %v1833_v40  ;;  %v1787_v34 = vadd.f32 0.18741608, %v1786_v26  ;;  %v4148_v57 = vadd.f32 %v3717_v1, %v1488_v7 }
 0x2b7   : > { %v2653_v29 = vclamps-f32 %v2175_v4, 1.0  ;;  %v1762_v62 = vmul.f32 %v2887_v41, %v4113_v21  ;;  %vm1766_vm4 = vweird.f32 %v4113_v21  ;;  %v1798_v48 = vadd.f32 0.4994258, %v1797_v3 }
 0x2b8   : > { %v1835_v5 = vmul.f32 %v1834_v6, %v4102_v33  ;;  %v4152_v59 = vmin.f32 %v1858_v14, 16.0  ;;  %v1770_v36 = vand.u32 2147483647, %v4113_v21  ;;  %v1825_v60 = vadd.f32 0.05243302, %v1824_v37  ;;  %v1491_v46 = vpop.f32.mrf.mxu2 }
 0x2b9   : > { %v2193_v28 = vadd.f32 1.0, %v2653_v29  ;;  %v1763_v10 = vsub.f32 1.0, %v1762_v62  ;;  %v1772_v19 = vand.u32 2147483648, %v4113_v21  ;;  %v1799_v18 = vmul.f32 %v1798_v48, %v4083_v49 }
 0x2ba   : > { %v1836_v54 = vadd.f32 0.112945676, %v1835_v5  ;;  %v1860_v1 = vmul.f32 2.1237322e-06, %v4152_v59  ;;  %vm1767_vm5 = vweird.f32 %v2887_v41  ;;  %v1788_v42 = vmul.f32 %v1787_v34, %v4083_v49 }
 0x2bb   : > { %v4159_v44 = vmul.f32 %v2193_v28, %v4073_v52  ;;  %v1764_v23 = vmul.f32 %v2887_v41, %v1763_v10  ;;  %v4162_v35 = vadd.f32 1.0, %v1799_v18  ;;  %v1871_v55 = vmul.f32 3.8918573e-05, %v4152_v59  ;;  %vm1768_vm6 = vmor %vm1766_vm4, %vm1767_vm5 }
 0x2bc   : > { %v1837_v61 = vmul.f32 %v1836_v54, %v4102_v33  ;;  %v1861_v8 = vadd.f32 0.00028619796, %v1860_v1  ;;  %v1826_v52 = vmul.f32 %v1825_v60, %v4102_v33  ;;  %v1750_v20 = vmul.f32 %v1749_v63, %v3988_v43 }
 0x2bd   : > { %v2225_v11 = vpack.c.bf16 %v4159_v44, %v4159_v44  ;;  %v2769_v27 = vpack.c.bf16 %v4159_v44, %v4089_v15  ;;  %v1765_v7 = vadd.f32 %v2887_v41, %v1764_v23  ;;  %v1773_v49 = vor.u32 1.1754944e-38, %v1772_v19 }
 0x2be   : > { %2888 = vrcp.f32 %v4162_v35  ;;  %v4176_v40 = vmul.f32 0.70710677, %v4148_v57  ;;  %vm1771_vm7 = vcmp.eq.f32.partialorder %v1770_v36, 8.507059e+37  ;;  %v1838_v26 = vadd.f32 0.4994258, %v1837_v61 }
 0x2bf   : > { %2777 = vst [vmem:[#allocation2 + $0x38] sm:$0xff] %v2769_v27   ;;  %v1769_v4 = vsel %vm1768_vm6, %v2887_v41, %v1765_v7  ;;  %v1862_v3 = vmul.f32 %v1861_v8, %v4152_v59  ;;  %v1789_v6 = vadd.f32 1.1283791, %v1788_v42  ;;  %v1872_v14 = vadd.f32 0.001143296, %v1871_v55 }
 0x2c0   : > { %v1774_v37 = vsel %vm1771_vm7, %v1773_v49, %v1769_v4  ;;  %v1827_v63 = vadd.f32 0.18741608, %v1826_v52  ;;  %v1839_v21 = vmul.f32 %v1838_v26, %v4102_v33  ;;  %v1810_v62 = vand.u32 2147483647, %v4162_v35  ;;  %v2900_v41 = vld [vmem:[%s2988_s20] ss:$0 sm:$0xff] }
 0x2c1   : > { %v1775_v43 = vmul.f32 %v1774_v37, %v1750_v20  ;;  %v1863_v29 = vadd.f32 0.0036580483, %v1862_v3  ;;  %v1873_v34 = vmul.f32 %v1872_v14, %v4152_v59  ;;  %v1898_v48 = vmul.f32 %v4176_v40, %v4176_v40 }
 0x2c2   : > { %v4185_v5 = vadd.f32 %v2900_v41, %v1491_v46  ;;  %v1511_v28 = vmul.f32 0.5, %v3973_v12  ;;  %v4189_v36 = vmul.f32 0.5, %v4041_v58  ;;  %v4191_v60 = vadd.f32 1.0, %v1839_v21  ;;  %v1493_v46 = vpop.f32.mrf.mxu2 }
 0x2c3   : > { %v2643_v10 = vclamps-f32 %v1775_v43, 1.0  ;;  %v1812_v18 = vand.u32 2147483648, %v4162_v35  ;;  %v1864_v54 = vmul.f32 %v1863_v29, %v4152_v59  ;;  %v1874_v1 = vadd.f32 0.014752088, %v1873_v34 }
 0x2c4   : > { %v2889_v19 = vpop.eup %2888  ;;  %v4195_v23 = vmin.f32 %v1898_v48, 16.0  ;;  %v1790_v61 = vmul.f32 %v1789_v6, %v4055_v31  ;;  %2890 = vrcp.f32 %v4191_v60  ;;  %vm1806_vm8 = vweird.f32 %v4162_v35 }
 0x2c5   : > { %v2183_v42 = vadd.f32 1.0, %v2643_v10  ;;  %v1802_v8 = vmul.f32 %v2889_v19, %v4162_v35  ;;  %vm4201_vm9 = vcmp.eq.f32.partialorder %v1810_v62, 8.507059e+37  ;;  %v1828_v58 = vmul.f32 %v1827_v63, %v4102_v33 }
 0x2c6   : > { %v4207_v55 = vmul.f32 0.70710677, %v4185_v5  ;;  %v1875_v31 = vmul.f32 %v1874_v1, %v4152_v59  ;;  %v1900_v52 = vmul.f32 2.1237322e-06, %v4195_v23  ;;  %vm1807_vm10 = vweird.f32 %v2889_v19 }
 0x2c7   : > { %v4209_v27 = vmul.f32 %v2183_v42, %v1511_v28  ;;  %v1803_v7 = vsub.f32 1.0, %v1802_v8  ;;  %v1813_v20 = vor.u32 1.1754944e-38, %v1812_v18  ;;  %v1865_v49 = vadd.f32 0.05243302, %v1864_v54  ;;  %vm1808_vm12 = vmor %vm1806_vm8, %vm1807_vm10 }
 0x2c8   : > { %v1911_v4 = vmul.f32 3.8918573e-05, %v4195_v23  ;;  %v1876_v37 = vadd.f32 0.112945676, %v1875_v31  ;;  %v1901_v6 = vadd.f32 0.00028619796, %v1900_v52  ;;  %v1938_v43 = vmul.f32 %v4207_v55, %v4207_v55 }
 0x2c9   : > { %v2215_v26 = vpack.c.bf16 %v4209_v27, %v4209_v27  ;;  %v2744_v33 = vpack.c.bf16 %v4209_v27, %v4131_v50  ;;  %v1804_v3 = vmul.f32 %v2889_v19, %v1803_v7  ;;  %v4220_v63 = vadd.f32 %v2900_v41, %v1493_v46 }
 0x2ca   : > { %v1912_v14 = vadd.f32 0.001143296, %v1911_v4  ;;  %v2891_v21 = vpop.eup %2890  ;;  %v1829_v62 = vadd.f32 1.1283791, %v1828_v58  ;;  %vm1846_vm11 = vweird.f32 %v4191_v60  ;;  %v1877_v34 = vmul.f32 %v1876_v37, %v4152_v59 }
 0x2cb   : > { %2772 = vst [vmem:[#allocation2 + $0x10] sm:$0xff] %v2744_v33   ;;  %v1805_v29 = vadd.f32 %v2889_v19, %v1804_v3  ;;  %v1842_v48 = vmul.f32 %v2891_v21, %v4191_v60  ;;  %v1852_v28 = vand.u32 2147483648, %v4191_v60  ;;  %v1866_v10 = vmul.f32 %v1865_v49, %v4152_v59 }
 0x2cc   : > { %v1902_v41 = vmul.f32 %v1901_v6, %v4195_v23  ;;  %v1878_v54 = vadd.f32 0.4994258, %v1877_v34  ;;  %v1913_v1 = vmul.f32 %v1912_v14, %v4195_v23  ;;  %v4232_v42 = vmin.f32 %v1938_v43, 16.0 }
 0x2cd   : > { %v1809_v18 = vsel %vm1808_vm12, %v2889_v19, %v1805_v29  ;;  %v1843_v58 = vsub.f32 1.0, %v1842_v48  ;;  %v4237_v7 = vmul.f32 0.70710677, %v4220_v63  ;;  %vm1847_vm13 = vweird.f32 %v2891_v21 }
 0x2ce   : > { %v1814_v8 = vsel %vm4201_vm9, %v1813_v20, %v1809_v18  ;;  %v1903_v35 = vadd.f32 0.0036580483, %v1902_v41  ;;  %v1879_v52 = vmul.f32 %v1878_v54, %v4152_v59  ;;  %v1914_v46 = vadd.f32 0.014752088, %v1913_v1  ;;  %vm1848_vm14 = vmor %vm1846_vm11, %vm1847_vm13 }
 0x2cf   : > { %v1815_v31 = vmul.f32 %v1814_v8, %v1790_v61  ;;  %v1940_v49 = vmul.f32 2.1237322e-06, %v4232_v42  ;;  %v1844_v19 = vmul.f32 %v2891_v21, %v1843_v58  ;;  %v1850_v4 = vand.u32 2147483647, %v4191_v60 }
 0x2d0   : > { %v1951_v33 = vmul.f32 3.8918573e-05, %v4232_v42  ;;  %v4243_v12 = vadd.f32 1.0, %v1879_v52  ;;  %v1915_v20 = vmul.f32 %v1914_v46, %v4195_v23  ;;  %v1853_v14 = vor.u32 1.1754944e-38, %v1852_v28 }
 0x2d1   : > { %v2644_v3 = vclamps-f32 %v1815_v31, 1.0  ;;  %v1941_v37 = vadd.f32 0.00028619796, %v1940_v49  ;;  %v1845_v6 = vadd.f32 %v2891_v21, %v1844_v19  ;;  %v1867_v61 = vadd.f32 0.18741608, %v1866_v10 }
 0x2d2   : > { %v1904_v43 = vmul.f32 %v1903_v35, %v4195_v23  ;;  %2892 = vrcp.f32 %v4243_v12  ;;  %v1952_v34 = vadd.f32 0.001143296, %v1951_v33  ;;  %v1978_v48 = vmul.f32 %v4237_v7, %v4237_v7 }
 0x2d3   : > { %v2184_v29 = vadd.f32 1.0, %v2644_v3  ;;  %v1830_v41 = vmul.f32 %v1829_v62, %v4086_v24  ;;  %v1849_v18 = vsel %vm1848_vm14, %v2891_v21, %v1845_v6  ;;  %vm1851_vm15 = vcmp.eq.f32.partialorder %v1850_v4, 8.507059e+37 }
 0x2d4   : > { %v1916_v54 = vadd.f32 0.112945676, %v1915_v20  ;;  %v1854_v10 = vsel %vm1851_vm15, %v1853_v14, %v1849_v18  ;;  %v1942_v1 = vmul.f32 %v1941_v37, %v4232_v42  ;;  %v1868_v60 = vmul.f32 %v1867_v61, %v4152_v59 }
 0x2d5   : > { %v4254_v28 = vmul.f32 %v2184_v29, %v4189_v36  ;;  %v1855_v8 = vmul.f32 %v1854_v10, %v1830_v41  ;;  %v1905_v31 = vadd.f32 0.05243302, %v1904_v43  ;;  %v1953_v24 = vmul.f32 %v1952_v34, %v4232_v42 }
 0x2d6   : > { %v1917_v58 = vmul.f32 %v1916_v54, %v4195_v23  ;;  %v4262_v21 = vmin.f32 %v1978_v48, 16.0  ;;  %v1513_v62 = vmul.f32 0.5, %v4045_v39  ;;  %v1943_v46 = vadd.f32 0.0036580483, %v1942_v1 }
 0x2d7   : > { %v2216_v35 = vpack.c.bf16 %v4254_v28, %v4254_v28  ;;  %v2645_v36 = vclamps-f32 %v1855_v8, 1.0  ;;  %v1954_v19 = vadd.f32 0.014752088, %v1953_v24  ;;  %v1869_v3 = vadd.f32 1.1283791, %v1868_v60 }
 0x2d8   : > { %v1918_v52 = vadd.f32 0.4994258, %v1917_v58  ;;  %v2893_v49 = vpop.eup %2892  ;;  %v1980_v4 = vmul.f32 2.1237322e-06, %v4262_v21  ;;  %v1991_v59 = vmul.f32 3.8918573e-05, %v4262_v21  ;;  %v1906_v34 = vmul.f32 %v1905_v31, %v4195_v23 }
 0x2d9   : > { %v2185_v33 = vadd.f32 1.0, %v2645_v36  ;;  %v1882_v20 = vmul.f32 %v2893_v49, %v4243_v12  ;;  %v1890_v37 = vand.u32 2147483647, %v4243_v12  ;;  %v1892_v6 = vand.u32 2147483648, %v4243_v12 }
 0x2da   : > { %v1919_v14 = vmul.f32 %v1918_v52, %v4195_v23  ;;  %v1955_v39 = vmul.f32 %v1954_v19, %v4232_v42  ;;  %v1981_v61 = vadd.f32 0.00028619796, %v1980_v4  ;;  %v1992_v48 = vadd.f32 0.001143296, %v1991_v59 }
 0x2db   : > { %v4272_v43 = vmul.f32 %v2185_v33, %v1513_v62  ;;  %v1883_v29 = vsub.f32 1.0, %v1882_v20  ;;  %vm1887_vm0 = vweird.f32 %v2893_v49  ;;  %v1944_v18 = vmul.f32 %v1943_v46, %v4232_v42 }
 0x2dc   : > { %v1920_v41 = vadd.f32 1.0, %v1919_v14  ;;  %v1956_v54 = vadd.f32 0.112945676, %v1955_v39  ;;  %v1993_v60 = vmul.f32 %v1992_v48, %v4262_v21  ;;  %v1982_v58 = vmul.f32 %v1981_v61, %v4262_v21 }
 0x2dd   : > { %v2217_v10 = vpack.c.bf16 %v4272_v43, %v4272_v43  ;;  %v2749_v1 = vpack.c.bf16 %v4272_v43, %v4254_v28  ;;  %v1884_v8 = vmul.f32 %v2893_v49, %v1883_v29  ;;  %vm1886_vm1 = vweird.f32 %v4243_v12 }
 0x2de   : > { %2894 = vrcp.f32 %v1920_v41  ;;  %v1907_v24 = vadd.f32 0.18741608, %v1906_v34  ;;  %v1957_v62 = vmul.f32 %v1956_v54, %v4232_v42  ;;  %vm1888_vm2 = vmor %vm1886_vm1, %vm1887_vm0  ;;  %v1893_v36 = vor.u32 1.1754944e-38, %v1892_v6 }
 0x2df   : > { %2773 = vst [vmem:[#allocation2 + $0x18] sm:$0xff] %v2749_v1   ;;  %v1885_v31 = vadd.f32 %v2893_v49, %v1884_v8  ;;  %v1945_v52 = vadd.f32 0.05243302, %v1944_v18  ;;  %v1994_v46 = vadd.f32 0.014752088, %v1993_v60  ;;  %v1870_v19 = vmul.f32 %v1869_v3, %v4137_v2 }
 0x2e0   : > { %vm1891_vm3 = vcmp.eq.f32.partialorder %v1890_v37, 8.507059e+37  ;;  %v1958_v59 = vadd.f32 0.4994258, %v1957_v62  ;;  %v1983_v20 = vadd.f32 0.0036580483, %v1982_v58  ;;  %v1908_v12 = vmul.f32 %v1907_v24, %v4195_v23 }
 0x2e1   : > { %v1889_v4 = vsel %vm1888_vm2, %v2893_v49, %v1885_v31  ;;  %v1995_v14 = vmul.f32 %v1994_v46, %v4262_v21  ;;  %v1946_v34 = vmul.f32 %v1945_v52, %v4232_v42  ;;  %v1514_v3 = vmul.f32 0.5, %v4123_v51 }
 0x2e2   : > { %v1894_v33 = vsel %vm1891_vm3, %v1893_v36, %v1889_v4  ;;  %v1959_v61 = vmul.f32 %v1958_v59, %v4232_v42  ;;  %v1984_v2 = vmul.f32 %v1983_v20, %v4262_v21  ;;  %v1909_v1 = vadd.f32 1.1283791, %v1908_v12 }
 0x2e3   : > { %v1895_v39 = vmul.f32 %v1894_v33, %v1870_v19  ;;  %v1996_v6 = vadd.f32 0.112945676, %v1995_v14  ;;  %v1930_v60 = vand.u32 2147483647, %v1920_v41  ;;  %v1932_v23 = vand.u32 2147483648, %v1920_v41 }
 0x2e4   : > { %v2895_v29 = vpop.eup %2894  ;;  %v1960_v54 = vadd.f32 1.0, %v1959_v61  ;;  %v1947_v58 = vadd.f32 0.18741608, %v1946_v34  ;;  %v1985_v36 = vadd.f32 0.05243302, %v1984_v2  ;;  %vm1926_vm5 = vweird.f32 %v1920_v41 }
 0x2e5   : > { %v2646_v48 = vclamps-f32 %v1895_v39, 1.0  ;;  %v1922_v18 = vmul.f32 %v2895_v29, %v1920_v41  ;;  %v1997_v49 = vmul.f32 %v1996_v6, %v4262_v21  ;;  %vm1927_vm4 = vweird.f32 %v2895_v29 }
 0x2e6   : > { %2896 = vrcp.f32 %v1960_v54  ;;  %v1910_v19 = vmul.f32 %v1909_v1, %v4176_v40  ;;  %vm1928_vm6 = vmor %vm1926_vm5, %vm1927_vm4  ;;  %v1933_v4 = vor.u32 1.1754944e-38, %v1932_v23  ;;  %vm1931_vm7 = vcmp.eq.f32.partialorder %v1930_v60, 8.507059e+37 }
 0x2e7   : > { %v2186_v37 = vadd.f32 1.0, %v2646_v48  ;;  %v1923_v8 = vsub.f32 1.0, %v1922_v18  ;;  %v1998_v62 = vadd.f32 0.4994258, %v1997_v49  ;;  %v1948_v33 = vmul.f32 %v1947_v58, %v4232_v42 }
 0x2e8   : > { %v1986_v12 = vmul.f32 %v1985_v36, %v4262_v21  ;;  %v1970_v18 = vand.u32 2147483647, %v1960_v54  ;;  %v1972_v2 = vand.u32 2147483648, %v1960_v54  ;;  %v1515_v49 = vmul.f32 0.5, %v4148_v57 }
 0x2e9   : > { %v4293_v31 = vmul.f32 %v2186_v37, %v1514_v3  ;;  %v1924_v24 = vmul.f32 %v2895_v29, %v1923_v8  ;;  %v1999_v51 = vmul.f32 %v1998_v62, %v4262_v21  ;;  %v1949_v41 = vadd.f32 1.1283791, %v1948_v33 }
 0x2ea   : > { %v1987_v40 = vadd.f32 0.18741608, %v1986_v12  ;;  %vm1966_vm9 = vweird.f32 %v1960_v54  ;;  %vm1971_vm11 = vcmp.eq.f32.partialorder %v1970_v18, 8.507059e+37  ;;  %v1973_v60 = vor.u32 1.1754944e-38, %v1972_v2 }
 0x2eb   : > { %v2218_v52 = vpack.c.bf16 %v4293_v31, %v4293_v31  ;;  %v1925_v46 = vadd.f32 %v2895_v29, %v1924_v24  ;;  %v2000_v20 = vadd.f32 1.0, %v1999_v51  ;;  %v1950_v8 = vmul.f32 %v1949_v41, %v4207_v55 }
 0x2ec   : > { %v2897_v14 = vpop.eup %2896  ;;  %v1988_v23 = vmul.f32 %v1987_v40, %v4262_v21  ;;  %v1516_v21 = vmul.f32 0.5, %v4185_v5  ;;  %v1517_v2 = vmul.f32 0.5, %v4220_v63 }
 0x2ed   : > { %v1929_v59 = vsel %vm1928_vm6, %v2895_v29, %v1925_v46  ;;  %v1962_v34 = vmul.f32 %v2897_v14, %v1960_v54  ;;  %2898 = vrcp.f32 %v2000_v20  ;;  %vm1967_vm8 = vweird.f32 %v2897_v14 }
 0x2ee   : > { %v1934_v39 = vsel %vm1931_vm7, %v1933_v4, %v1929_v59  ;;  %vm1968_vm10 = vmor %vm1966_vm9, %vm1967_vm8  ;;  %v1989_v51 = vadd.f32 1.1283791, %v1988_v23  ;;  %v2010_v59 = vand.u32 2147483647, %v2000_v20  ;;  %vm2006_vm13 = vweird.f32 %v2000_v20 }
 0x2ef   : > { %v1935_v61 = vmul.f32 %v1934_v39, %v1910_v19  ;;  %v1963_v48 = vsub.f32 1.0, %v1962_v34  ;;  %v2012_v19 = vand.u32 2147483648, %v2000_v20 }
 0x2f0   : > { %vm2011_vm15 = vcmp.eq.f32.partialorder %v2010_v59, 8.507059e+37 }
 0x2f1   : > { %v2647_v6 = vclamps-f32 %v1935_v61, 1.0  ;;  %v1964_v3 = vmul.f32 %v2897_v14, %v1963_v48  ;;  %v2013_v12 = vor.u32 1.1754944e-38, %v2012_v19 }
 0x2f3   : > { %v2187_v29 = vadd.f32 1.0, %v2647_v6  ;;  %v1965_v37 = vadd.f32 %v2897_v14, %v1964_v3  ;;  %v2899_v1 = vpop.eup %2898 }
 0x2f4   : > { %v2002_v62 = vmul.f32 %v2899_v1, %v2000_v20  ;;  %vm2007_vm12 = vweird.f32 %v2899_v1 }
 0x2f5   : > { %v4302_v42 = vmul.f32 %v2187_v29, %v1515_v49  ;;  %v1969_v24 = vsel %vm1968_vm10, %v2897_v14, %v1965_v37  ;;  %vm2008_vm14 = vmor %vm2006_vm13, %vm2007_vm12  ;;  %v1990_v14 = vmul.f32 %v1989_v51, %v4237_v7 }
 0x2f6   : > { %v1974_v36 = vsel %vm1971_vm11, %v1973_v60, %v1969_v24  ;;  %v2003_v54 = vsub.f32 1.0, %v2002_v62 }
 0x2f7   : > { %v2219_v58 = vpack.c.bf16 %v4302_v42, %v4302_v42  ;;  %v2754_v57 = vpack.c.bf16 %v4302_v42, %v4293_v31  ;;  %v1975_v46 = vmul.f32 %v1974_v36, %v1950_v8 }
 0x2f8   : > { %v2004_v4 = vmul.f32 %v2899_v1, %v2003_v54 }
 0x2f9   : > { %2774 = vst [vmem:[#allocation2 + $0x20] sm:$0xff] %v2754_v57   ;;  %v2648_v55 = vclamps-f32 %v1975_v46, 1.0 }
 0x2fa   : > { %v2005_v39 = vadd.f32 %v2899_v1, %v2004_v4 }
 0x2fb   : > { %v2188_v33 = vadd.f32 1.0, %v2648_v55 }
 0x2fc   : > { %v2009_v34 = vsel %vm2008_vm14, %v2899_v1, %v2005_v39 }
 0x2fd   : > { %v4311_v61 = vmul.f32 %v2188_v33, %v1516_v21  ;;  %v2014_v6 = vsel %vm2011_vm15, %v2013_v12, %v2009_v34 }
 0x2fe   : > { %v2015_v48 = vmul.f32 %v2014_v6, %v1990_v14 }
 0x2ff   : > { %v2220_v41 = vpack.c.bf16 %v4311_v61, %v4311_v61 }
 0x300   : > { %v2649_v18 = vclamps-f32 %v2015_v48, 1.0 }
 0x302   : > { %v2189_v5 = vadd.f32 1.0, %v2649_v18 }
 0x304   : > { %v4317_v40 = vmul.f32 %v2189_v5, %v1517_v2  ;;  %2245 = sbr.rel (%p2654_p5) target bundleno = 970 (0x3ca), region = 60 }
 0x306   : > { %v2221_v20 = vpack.c.bf16 %v4317_v40, %v4317_v40  ;;  %v2759_v49 = vpack.c.bf16 %v4317_v40, %v4311_v61 }
 0x308   : > { %2775 = vst [vmem:[#allocation2 + $0x28] sm:$0xff] %v2759_v49  }
 0x309   : > { %v2730_v7 = vld [vmem:[%s4456_s6 + $0x38] sm:$0xff]  ;;  %v2729_v63 = vld [vmem:[%s4456_s6 + $0x30] sm:$0xff]  ;;  %v2728_v29 = vld [vmem:[%s4456_s6 + $0x28] sm:$0xff]  ;;  %v2282_v60 = vunpack.c.l.b16 %v2210_v25  ;;  %v2283_v23 = vunpack.c.l.b16 %v2211_v22  ;;  %v2286_v57 = vunpack.c.l.b16 %v2214_v13  ;;  %v2287_v24 = vunpack.c.l.b16 %v2215_v26 }
 0x30a   : > { %2362 = vmatpush.bf16.msra.mxu0 %v2730_v7  ;;  %2802 = vmatpush.bf16.msra.mxu1 %v2730_v7  ;;  %v2727_v3 = vld [vmem:[%s4456_s6 + $0x20] sm:$0xff]  ;;  %v2726_v37 = vld [vmem:[%s4456_s6 + $0x18] sm:$0xff]  ;;  %v2725_v1 = vld [vmem:[%s4456_s6 + $0x10] sm:$0xff]  ;;  %v2290_v53 = vunpack.c.l.b16 %v2218_v52  ;;  %v2291_v25 = vunpack.c.l.b16 %v2219_v58  ;;  %v2294_v16 = vunpack.c.l.b16 %v2222_v17  ;;  %v2295_v22 = vunpack.c.l.b16 %v2223_v45 }
 0x30b   : > { %2803 = vmatpush.bf16.msra.mxu2 %v2730_v7  ;;  %2804 = vmatpush.bf16.msra.mxu3 %v2730_v7  ;;  %v2724_v8 = vld [vmem:[%s4456_s6 + $0x8] sm:$0xff]  ;;  %v2723_v62 = vld [vmem:[%s4456_s6] sm:$0xff]  ;;  %v2298_v50 = vpack.c.b16 %v2283_v23, %v2282_v60  ;;  %v2300_v13 = vpack.c.b16 %v2287_v24, %v2286_v57  ;;  %v2284_v0 = vunpack.c.l.b16 %v2212_v47  ;;  %v2285_v17 = vunpack.c.l.b16 %v2213_v9 }
 0x30c   : > { %v2302_v27 = vpack.c.b16 %v2291_v25, %v2290_v53  ;;  %v2304_v26 = vpack.c.b16 %v2295_v22, %v2294_v16  ;;  %v2288_v38 = vunpack.c.l.b16 %v2216_v35  ;;  %v2289_v45 = vunpack.c.l.b16 %v2217_v10  ;;  %v2901_v10 = vld [vmem:[%s4457_s7] ss:$0 sm:$0xff] }
 0x30d   : > { %v2292_v31 = vunpack.c.l.b16 %v2220_v41  ;;  %v2293_v56 = vunpack.c.l.b16 %v2221_v20  ;;  %v2296_v47 = vunpack.c.l.b16 %v2224_v32  ;;  %v2297_v30 = vunpack.c.l.b16 %v2225_v11 }
 0x30e   : > { %2363 = vmatpush.bf16.msra.mxu0 %v2729_v63  ;;  %2805 = vmatpush.bf16.msra.mxu1 %v2729_v63  ;;  %v2299_v9 = vpack.c.b16 %v2285_v17, %v2284_v0  ;;  %v2301_v28 = vpack.c.b16 %v2289_v45, %v2288_v38 }
 0x30f   : > { %2806 = vmatpush.bf16.msra.mxu2 %v2729_v63  ;;  %2807 = vmatpush.bf16.msra.mxu3 %v2729_v63  ;;  %v2303_v35 = vpack.c.b16 %v2293_v56, %v2292_v31  ;;  %v2305_v43 = vpack.c.b16 %v2297_v30, %v2296_v47 }
 0x312   : > { %2364 = vmatpush.bf16.msra.mxu0 %v2728_v29  ;;  %2808 = vmatpush.bf16.msra.mxu1 %v2728_v29 }
 0x313   : > { %2809 = vmatpush.bf16.msra.mxu2 %v2728_v29  ;;  %2810 = vmatpush.bf16.msra.mxu3 %v2728_v29 }
 0x316   : > { %2365 = vmatpush.bf16.msra.mxu0 %v2727_v3  ;;  %2811 = vmatpush.bf16.msra.mxu1 %v2727_v3 }
 0x317   : > { %2812 = vmatpush.bf16.msra.mxu2 %v2727_v3  ;;  %2813 = vmatpush.bf16.msra.mxu3 %v2727_v3 }
 0x31a   : > { %2366 = vmatpush.bf16.msra.mxu0 %v2726_v37  ;;  %2814 = vmatpush.bf16.msra.mxu1 %v2726_v37 }
 0x31b   : > { %2815 = vmatpush.bf16.msra.mxu2 %v2726_v37  ;;  %2816 = vmatpush.bf16.msra.mxu3 %v2726_v37 }
 0x31e   : > { %2367 = vmatpush.bf16.msra.mxu0 %v2725_v1  ;;  %2817 = vmatpush.bf16.msra.mxu1 %v2725_v1 }
 0x31f   : > { %2818 = vmatpush.bf16.msra.mxu2 %v2725_v1  ;;  %2819 = vmatpush.bf16.msra.mxu3 %v2725_v1 }
 0x322   : > { %2368 = vmatpush.bf16.msra.mxu0 %v2724_v8  ;;  %2820 = vmatpush.bf16.msra.mxu1 %v2724_v8 }
 0x323   : > { %2821 = vmatpush.bf16.msra.mxu2 %v2724_v8  ;;  %2822 = vmatpush.bf16.msra.mxu3 %v2724_v8 }
 0x326   : > { %2369 = vmatpush.bf16.msra.mxu0 %v2723_v62  ;;  %2823 = vmatpush.bf16.msra.mxu1 %v2723_v62 }
 0x327   : > { %2824 = vmatpush.bf16.msra.mxu2 %v2723_v62  ;;  %2825 = vmatpush.bf16.msra.mxu3 %v2723_v62 }
 0x329   : > { %2370 = vmatmul.bf16.vlgmr.msra.gmra.mxu0 %v2298_v50  ;;  %2380 = vmatmul.bf16.vlgmr.msra.gmra.mxu1 %v2300_v13 }
 0x32a   : > { %2390 = vmatmul.bf16.vlgmr.msra.gmra.mxu2 %v2302_v27  ;;  %2400 = vmatmul.bf16.vlgmr.msra.gmra.mxu3 %v2304_v26 }
 0x339   : > { %2375 = vmatmul.bf16.gmra.mxu0 %v2299_v9  ;;  %2385 = vmatmul.bf16.gmra.mxu1 %v2301_v28 }
 0x33a   : > { %2395 = vmatmul.bf16.gmra.mxu2 %v2303_v35  ;;  %2405 = vmatmul.bf16.gmra.mxu3 %v2305_v43 }
 0x3a6   : > { %v2371_v52 = vpop.f32.mrf.mxu0  ;;  %v2381_v42 = vpop.f32.mrf.mxu1 }
 0x3a7   : > { %v2372_v15 = vadd.f32 %v2901_v10, %v2371_v52  ;;  %v2382_v32 = vadd.f32 %v2901_v10, %v2381_v42 }
 0x3a9   : > { %2411 = vst [vmem:[%s4458_s8] sm:$0xff] %v2372_v15 }
 0x3aa   : > { %2415 = vst [vmem:[%s4458_s8 + $0x20] sm:$0xff] %v2382_v32 }
 0x3ad   : > { %v2391_v44 = vpop.f32.mrf.mxu2  ;;  %v2401_v11 = vpop.f32.mrf.mxu3 }
 0x3ae   : > { %v2392_v58 = vadd.f32 %v2901_v10, %v2391_v44  ;;  %v2402_v36 = vadd.f32 %v2901_v10, %v2401_v11  ;;  %v2373_v46 = vpop.f32.mrf.mxu0  ;;  %v2383_v54 = vpop.f32.mrf.mxu1 }
 0x3af   : > { %v2374_v51 = vadd.f32 %v2901_v10, %v2373_v46  ;;  %v2384_v19 = vadd.f32 %v2901_v10, %v2383_v54 }
 0x3b0   : > { %2419 = vst [vmem:[%s4458_s8 + $0x40] sm:$0xff] %v2392_v58 }
 0x3b1   : > { %2423 = vst [vmem:[%s4458_s8 + $0x60] sm:$0xff] %v2402_v36 }
 0x3b2   : > { %2412 = vst [vmem:[%s4458_s8 + $0x8] sm:$0xff] %v2374_v51 }
 0x3b3   : > { %2416 = vst [vmem:[%s4458_s8 + $0x28] sm:$0xff] %v2384_v19 }
 0x3b5   : > { %v2393_v55 = vpop.f32.mrf.mxu2  ;;  %v2403_v4 = vpop.f32.mrf.mxu3 }
 0x3b6   : > { %v2394_v59 = vadd.f32 %v2901_v10, %v2393_v55  ;;  %v2404_v21 = vadd.f32 %v2901_v10, %v2403_v4  ;;  %v2376_v33 = vpop.f32.mrf.mxu0  ;;  %v2386_v39 = vpop.f32.mrf.mxu1 }
 0x3b7   : > { %v2377_v12 = vadd.f32 %v2901_v10, %v2376_v33  ;;  %v2387_v61 = vadd.f32 %v2901_v10, %v2386_v39 }
 0x3b8   : > { %2420 = vst [vmem:[%s4458_s8 + $0x48] sm:$0xff] %v2394_v59 }
 0x3b9   : > { %2424 = vst [vmem:[%s4458_s8 + $0x68] sm:$0xff] %v2404_v21 }
 0x3ba   : > { %2413 = vst [vmem:[%s4458_s8 + $0x10] sm:$0xff] %v2377_v12 }
 0x3bb   : > { %2417 = vst [vmem:[%s4458_s8 + $0x30] sm:$0xff] %v2387_v61 }
 0x3bd   : > { %v2396_v14 = vpop.f32.mrf.mxu2  ;;  %v2406_v34 = vpop.f32.mrf.mxu3 }
 0x3be   : > { %v2397_v6 = vadd.f32 %v2901_v10, %v2396_v14  ;;  %v2407_v41 = vadd.f32 %v2901_v10, %v2406_v34  ;;  %v2378_v48 = vpop.f32.mrf.mxu0  ;;  %v2388_v18 = vpop.f32.mrf.mxu1 }
 0x3bf   : > { %v2379_v2 = vadd.f32 %v2901_v10, %v2378_v48  ;;  %v2389_v5 = vadd.f32 %v2901_v10, %v2388_v18 }
 0x3c0   : > { %2421 = vst [vmem:[%s4458_s8 + $0x50] sm:$0xff] %v2397_v6 }
 0x3c1   : > { %2425 = vst [vmem:[%s4458_s8 + $0x70] sm:$0xff] %v2407_v41 }
 0x3c2   : > { %2414 = vst [vmem:[%s4458_s8 + $0x18] sm:$0xff] %v2379_v2 }
 0x3c3   : > { %2418 = vst [vmem:[%s4458_s8 + $0x38] sm:$0xff] %v2389_v5 }
 0x3c5   : > { %v2398_v40 = vpop.f32.mrf.mxu2  ;;  %v2408_v20 = vpop.f32.mrf.mxu3 }
 0x3c6   : > { %v2399_v49 = vadd.f32 %v2901_v10, %v2398_v40  ;;  %v2409_v7 = vadd.f32 %v2901_v10, %v2408_v20 }
 0x3c8   : > { %2422 = vst [vmem:[%s4458_s8 + $0x58] sm:$0xff] %v2399_v49 }
 0x3c9   : > { %2426 = vst [vmem:[%s4458_s8 + $0x78] sm:$0xff] %v2409_v7 }
 0x3ca PF: > { %s18_s27 = sadd.s32 1, %s2908_s27  }
 0x3cb   : > { %p15_p6 = scmp.ge.s32.totalorder %s18_s27, 4  }
 0x3cd   :  { %17 = sbr.rel (!%p15_p6) target bundleno = 1 (0x1), region = 95 }

</bundles_post_ra>
